<compile_context>
chip_gen: v7x
topology: tpu7x:2x2x1
jax: 0.10.0
libtpu: 0.0.40
codegen_flags: <defaults>
</compile_context>

<pallas_src>
import functools
import math

import numpy as np
import jax
import jax.numpy as jnp
from jax import lax
from jax.experimental import pallas as pl
from jax.experimental.pallas import tpu as pltpu


_VMEM_LIMIT = 48 * 1024 * 1024   # headroom for v7x's 64 MiB/TC; fine on v5e/v6e


def _tile(dim, target, align):
    """Largest tile <= target that divides dim and is a multiple of align
    (falls back to the full dim, which BlockSpec always allows)."""
    if dim <= target:
        return dim
    t = (target // align) * align
    while t >= align:
        if dim % t == 0:
            return t
        t -= align
    return dim


def _padded_tags(num_labels):
    return ((num_labels + 127) // 128) * 128


# ------------------------------ Pallas kernels ------------------------------

def _linear_kernel(x_ref, w_ref, b_ref, o_ref, *, activation):
    # bf16 operands, f32 accumulation on the MXU; epilogue in f32.
    y = jnp.dot(x_ref[...], w_ref[...], preferred_element_type=jnp.float32)
    y = y + b_ref[...]
    if activation == "gelu":
        # TODO(synk): HF BERT uses erf-GELU; tanh approximation used here (EUP
        # friendly, guaranteed Mosaic lowering) -> small systematic difference.
        y = jax.nn.gelu(y, approximate=True)
    o_ref[...] = y.astype(o_ref.dtype)


def linear(x, w, b, activation="none", out_dtype=jnp.bfloat16):
    M, Kin = x.shape
    N = w.shape[1]
    tm = _tile(M, 256, 8)
    tn = _tile(N, 512, 128)
    # grid = (n, m) with m innermost -> the (Kin, tn) weight tile stays
    # resident across the M sweep (no re-DMA of weights).
    # TODO(synk): for very large inner dims (K >> 4k) add a K grid axis with a
    # VMEM f32 accumulator; not needed at BERT-class shapes.
    return pl.pallas_call(
        functools.partial(_linear_kernel, activation=activation),
        out_shape=jax.ShapeDtypeStruct((M, N), out_dtype),
        grid=(N // tn, M // tm),
        in_specs=[pl.BlockSpec((tm, Kin), lambda n, m: (m, 0)),
                  pl.BlockSpec((Kin, tn), lambda n, m: (0, n)),
                  pl.BlockSpec((1, tn), lambda n, m: (0, n))],
        out_specs=pl.BlockSpec((tm, tn), lambda n, m: (m, n)),
        compiler_params=pltpu.CompilerParams(
            dimension_semantics=("parallel", "parallel"),
            vmem_limit_bytes=_VMEM_LIMIT),
    )(x, w, b.reshape(1, N))


def _linear_res_ln_kernel(x_ref, w_ref, b_ref, r_ref, g_ref, bt_ref, o_ref, *, eps):
    # Fused: y = x @ w + b + residual ; out = LayerNorm(y)
    y = jnp.dot(x_ref[...], w_ref[...], preferred_element_type=jnp.float32)
    y = y + b_ref[...] + r_ref[...].astype(jnp.float32)
    mu = jnp.mean(y, axis=-1, keepdims=True)
    yc = y - mu
    var = jnp.mean(yc * yc, axis=-1, keepdims=True)
    inv = lax.rsqrt(var + eps)
    o_ref[...] = (yc * inv * g_ref[...] + bt_ref[...]).astype(o_ref.dtype)


def linear_res_ln(x, w, b, res, gamma, beta, eps=1e-12, out_dtype=jnp.bfloat16):
    M, Kin = x.shape
    N = w.shape[1]
    tm = _tile(M, 256, 8)
    return pl.pallas_call(
        functools.partial(_linear_res_ln_kernel, eps=eps),
        out_shape=jax.ShapeDtypeStruct((M, N), out_dtype),
        grid=(M // tm,),
        in_specs=[pl.BlockSpec((tm, Kin), lambda m: (m, 0)),
                  pl.BlockSpec((Kin, N), lambda m: (0, 0)),   # weight resident
                  pl.BlockSpec((1, N), lambda m: (0, 0)),
                  pl.BlockSpec((tm, N), lambda m: (m, 0)),
                  pl.BlockSpec((1, N), lambda m: (0, 0)),
                  pl.BlockSpec((1, N), lambda m: (0, 0))],
        out_specs=pl.BlockSpec((tm, N), lambda m: (m, 0)),
        compiler_params=pltpu.CompilerParams(
            dimension_semantics=("parallel",),
            vmem_limit_bytes=_VMEM_LIMIT),
    )(x, w, b.reshape(1, N), res, gamma.reshape(1, N), beta.reshape(1, N))


def _ln_kernel(x_ref, g_ref, b_ref, o_ref, *, eps):
    x = x_ref[...].astype(jnp.float32)
    mu = jnp.mean(x, axis=-1, keepdims=True)
    xc = x - mu
    var = jnp.mean(xc * xc, axis=-1, keepdims=True)
    o_ref[...] = (xc * lax.rsqrt(var + eps) * g_ref[...] + b_ref[...]).astype(o_ref.dtype)


def layernorm(x, gamma, beta, eps=1e-12, out_dtype=jnp.bfloat16):
    M, H = x.shape
    tm = _tile(M, 512, 8)
    return pl.pallas_call(
        functools.partial(_ln_kernel, eps=eps),
        out_shape=jax.ShapeDtypeStruct((M, H), out_dtype),
        grid=(M // tm,),
        in_specs=[pl.BlockSpec((tm, H), lambda m: (m, 0)),
                  pl.BlockSpec((1, H), lambda m: (0, 0)),
                  pl.BlockSpec((1, H), lambda m: (0, 0))],
        out_specs=pl.BlockSpec((tm, H), lambda m: (m, 0)),
        compiler_params=pltpu.CompilerParams(
            dimension_semantics=("parallel",),
            vmem_limit_bytes=_VMEM_LIMIT),
    )(x, gamma.reshape(1, H), beta.reshape(1, H))


def _attn_kernel(qkv_ref, bias_ref, o_ref, *, nh, dh, scale):
    # One batch row per grid step; all heads packed on the lane axis so the
    # output store is lane-dense (width H) and no [B,nh,S,dh] transposes are
    # needed outside the kernel.
    qkv = qkv_ref[...]                       # (S, 3H) bf16
    bias = bias_ref[...]                     # (1, S)  f32
    H = nh * dh
    outs = []
    for h in range(nh):
        q = qkv[:, h * dh:(h + 1) * dh]
        k = qkv[:, H + h * dh:H + (h + 1) * dh]
        v = qkv[:, 2 * H + h * dh:2 * H + (h + 1) * dh]
        s = lax.dot_general(q, k, (((1,), (1,)), ((), ())),
                            preferred_element_type=jnp.float32) * scale     # (S,S)
        s = s + bias                                                         # f32 mask
        m = jnp.max(s, axis=-1, keepdims=True)
        p = jnp.exp(s - m)
        p = p * pl.reciprocal(jnp.sum(p, axis=-1, keepdims=True), approx=True)
        outs.append(jnp.dot(p.astype(v.dtype), v,
                            preferred_element_type=jnp.float32))             # (S,dh)
    o_ref[...] = jnp.concatenate(outs, axis=-1).astype(o_ref.dtype)


def attention(qkv, attn_bias, nh, out_dtype=jnp.bfloat16):
    B, S, threeH = qkv.shape
    H = threeH // 3
    dh = H // nh
    return pl.pallas_call(
        functools.partial(_attn_kernel, nh=nh, dh=dh, scale=1.0 / math.sqrt(dh)),
        out_shape=jax.ShapeDtypeStruct((B, S, H), out_dtype),
        grid=(B,),
        in_specs=[pl.BlockSpec((None, S, threeH), lambda b: (b, 0, 0)),
                  pl.BlockSpec((None, 1, S), lambda b: (b, 0, 0))],
        out_specs=pl.BlockSpec((None, S, H), lambda b: (b, 0, 0)),
        compiler_params=pltpu.CompilerParams(
            dimension_semantics=("parallel",),
            vmem_limit_bytes=_VMEM_LIMIT),
    )(qkv, attn_bias)


def _crf_nll_kernel(emit_ref, oh_ref, valid_ref, last_ref,
                    start_ref, end_ref, trans_ref, o_ref):
    # One batch row per grid step. Tag axis is padded to Kp lanes; padded tags
    # have start/incoming-transition = -1e4 so they contribute ~0 probability.
    emit = emit_ref[...]                     # (T, Kp) f32 emissions (compacted)
    oh = oh_ref[...]                         # (T, Kp) one-hot gold tags
    valid = valid_ref[...]                   # (T, 1)
    lastm = last_ref[...]                    # (T, 1)  1.0 at last valid position
    start = start_ref[...]                   # (1, Kp)
    end = end_ref[...]                       # (1, Kp)
    trans = trans_ref[...]                   # (Kp, Kp)
    T, Kp = emit.shape

    # ---- numerator: score of the gold tag path ----
    start_score = jnp.sum(oh[0:1, :] * start, axis=-1, keepdims=True)          # (1,1)
    emit_score = jnp.sum(oh * emit * valid, keepdims=True)                     # (1,1)
    # transition score via one MXU matmul: rows of trans selected by prev tag.
    row_trans = jnp.dot(oh[:-1, :], trans, preferred_element_type=jnp.float32)  # (T-1,Kp)
    trans_score = jnp.sum(row_trans * oh[1:, :] * valid[1:, :], keepdims=True)  # (1,1)
    last_oh = jnp.sum(oh * lastm, axis=0, keepdims=True)                        # (1,Kp)
    end_score = jnp.sum(last_oh * end, axis=-1, keepdims=True)                  # (1,1)
    numerator = start_score + emit_score + trans_score + end_score

    # ---- denominator: log partition via the forward algorithm ----
    # logsumexp_i(alpha[i] + trans[i, j]) is computed as a (1,Kp)@(Kp,Kp) MXU
    # matmul against exp(trans) with a shared running max (blocked / padded
    # transitions are -1e4 -> exp == 0 exactly, so the clamp only triggers on
    # unreachable tags and contributes ~exp(-69) ~= 0 probability mass).
    exp_trans = jnp.exp(trans)                                                  # (Kp,Kp)
    alpha0 = start + emit[0:1, :]                                               # (1,Kp)

    def body(t, alpha):
        emit_t = emit_ref[pl.ds(t, 1), :]                                       # (1,Kp)
        valid_t = valid_ref[pl.ds(t, 1), :]                                     # (1,1)
        m = jnp.max(alpha, axis=-1, keepdims=True)                              # (1,1)
        p = jnp.exp(alpha - m)                                                  # (1,Kp)
        s = jnp.dot(p, exp_trans, preferred_element_type=jnp.float32)           # (1,Kp)
        new_alpha = jnp.log(jnp.maximum(s, 1e-30)) + m + emit_t
        return jnp.where(valid_t > 0.5, new_alpha, alpha)

    alpha = lax.fori_loop(1, T, body, alpha0)
    fin = alpha + end
    m = jnp.max(fin, axis=-1, keepdims=True)
    denom = jnp.log(jnp.sum(jnp.exp(fin - m), axis=-1, keepdims=True)) + m      # (1,1)

    o_ref[...] = denom - numerator                                              # per-row NLL


def crf_nll(emissions, tag_onehot, valid, lastm, start_t, end_t, trans):
    B, T, Kp = emissions.shape
    return pl.pallas_call(
        _crf_nll_kernel,
        out_shape=jax.ShapeDtypeStruct((B, 1, 1), jnp.float32),
        grid=(B,),
        in_specs=[pl.BlockSpec((None, T, Kp), lambda b: (b, 0, 0)),
                  pl.BlockSpec((None, T, Kp), lambda b: (b, 0, 0)),
                  pl.BlockSpec((None, T, 1), lambda b: (b, 0, 0)),
                  pl.BlockSpec((None, T, 1), lambda b: (b, 0, 0)),
                  pl.BlockSpec((1, Kp), lambda b: (0, 0)),
                  pl.BlockSpec((1, Kp), lambda b: (0, 0)),
                  pl.BlockSpec((Kp, Kp), lambda b: (0, 0))],
        out_specs=pl.BlockSpec((None, 1, 1), lambda b: (b, 0, 0)),
        compiler_params=pltpu.CompilerParams(
            dimension_semantics=("parallel",),
            vmem_limit_bytes=_VMEM_LIMIT),
    )(emissions, tag_onehot, valid, lastm,
      start_t.reshape(1, Kp), end_t.reshape(1, Kp), trans)


# -------------------------- parameters (deterministic) ----------------------

def init_params(key, cfg):
    keys = jax.random.split(key, 64)
    ki = iter(keys)

    def nrm(shape, dtype=jnp.bfloat16):
        return (0.02 * jax.random.normal(next(ki), shape, jnp.float32)).astype(dtype)

    H, F, L = cfg["hidden"], cfg["ffn"], cfg["layers"]
    K = cfg["num_labels"]
    Kp = _padded_tags(K)

    p = {
        "word_emb": nrm((cfg["vocab_size"], H), jnp.float32),
        "pos_emb": nrm((cfg["max_pos"], H), jnp.float32),
        "type_emb": nrm((cfg["type_vocab"], H), jnp.float32),
        "emb_ln_g": jnp.ones((H,), jnp.float32),
        "emb_ln_b": jnp.zeros((H,), jnp.float32),
        "layers": [],
    }
    for _ in range(L):
        p["layers"].append(dict(
            wqkv=nrm((H, 3 * H)), bqkv=jnp.zeros((3 * H,), jnp.float32),  # fused Q|K|V
            wo=nrm((H, H)), bo=jnp.zeros((H,), jnp.float32),
            ln1_g=jnp.ones((H,), jnp.float32), ln1_b=jnp.zeros((H,), jnp.float32),
            w1=nrm((H, F)), b1=jnp.zeros((F,), jnp.float32),
            w2=nrm((F, H)), b2=jnp.zeros((H,), jnp.float32),
            ln2_g=jnp.ones((H,), jnp.float32), ln2_b=jnp.zeros((H,), jnp.float32),
        ))

    # Classifier with the tag dim padded to Kp lanes (padded tags emit 0).
    cls_w = jnp.zeros((H, Kp), jnp.float32).at[:, :K].set(
        0.02 * jax.random.normal(next(ki), (H, K), jnp.float32))
    p["cls_w"] = cls_w.astype(jnp.bfloat16)
    p["cls_b"] = jnp.zeros((Kp,), jnp.float32)

    # CRF params (torchcrf init: uniform(-0.1, 0.1)) + BIO_Tag_CRF constraints,
    # then padded so padded tags are unreachable (start / incoming trans -1e4).
    st = np.asarray(jax.random.uniform(next(ki), (K,), jnp.float32, -0.1, 0.1)).copy()
    en = np.asarray(jax.random.uniform(next(ki), (K,), jnp.float32, -0.1, 0.1)).copy()
    tr = np.asarray(jax.random.uniform(next(ki), (K, K), jnp.float32, -0.1, 0.1)).copy()
    assert K % 2 == 1
    U = (K - 1) // 2
    for i in range(U, 2 * U):
        st[i] = -10000.0
        for j in range(K):
            if j == i or j + U == i:
                continue
            tr[j, i] = -10000.0
    st_p = np.full((Kp,), -10000.0, np.float32); st_p[:K] = st
    en_p = np.zeros((Kp,), np.float32); en_p[:K] = en
    tr_p = np.full((Kp, Kp), -10000.0, np.float32); tr_p[:K, :K] = tr
    p["crf_start"] = jnp.asarray(st_p)
    p["crf_end"] = jnp.asarray(en_p)
    p["crf_trans"] = jnp.asarray(tr_p)
    return p


# --------------------------------- forward ----------------------------------

def forward(params, cfg, input_ids, token_type_ids, attention_mask, labels):
    B, S = input_ids.shape
    H, nh, K = cfg["hidden"], cfg["heads"], cfg["num_labels"]
    Kp = _padded_tags(K)

    # embeddings (gather is XLA glue; LayerNorm is a Pallas kernel)
    x = (params["word_emb"][input_ids]
         + params["pos_emb"][:S][None, :, :]
         + params["type_emb"][token_type_ids])                     # (B,S,H) f32
    x = layernorm(x.reshape(B * S, H), params["emb_ln_g"], params["emb_ln_b"])
    # TODO(synk): dropout layers skipped (non-deterministic); identity here.

    attn_bias = ((1.0 - attention_mask.astype(jnp.float32)) * -1e9).reshape(B, 1, S)

    for lp in params["layers"]:
        qkv = linear(x, lp["wqkv"], lp["bqkv"])                          # (M,3H) bf16
        ctx = attention(qkv.reshape(B, S, 3 * H), attn_bias, nh=nh)      # (B,S,H) bf16
        x = linear_res_ln(ctx.reshape(B * S, H), lp["wo"], lp["bo"], x,
                          lp["ln1_g"], lp["ln1_b"])                      # wo + res + LN1
        ff = linear(x, lp["w1"], lp["b1"], activation="gelu")
        x = linear_res_ln(ff, lp["w2"], lp["b2"], x, lp["ln2_g"], lp["ln2_b"])

    logits = linear(x, params["cls_w"], params["cls_b"],
                    out_dtype=jnp.float32).reshape(B, S, Kp)             # f32 emissions

    # CRF over valid (label != -100) positions, compacted to the front
    # (equivalent of logit[mask] / label[mask] + pad_sequence in the reference).
    mask = labels != -100
    seq_lens = jnp.sum(mask.astype(jnp.int32), axis=1)                   # (B,)
    order = jnp.argsort(jnp.where(mask, 0, 1).astype(jnp.int32),
                        axis=1, stable=True)                             # valid first
    padded_logits = jnp.take_along_axis(logits, order[:, :, None], axis=1)
    gathered_labels = jnp.take_along_axis(labels, order, axis=1)
    pos = jnp.arange(S)[None, :]
    valid = (pos < seq_lens[:, None]).astype(jnp.float32)
    lastm = (pos == seq_lens[:, None] - 1).astype(jnp.float32)
    padded_labels = jnp.where(valid > 0, gathered_labels, 0)
    tag_onehot = jax.nn.one_hot(padded_labels, Kp, dtype=jnp.float32)
    # TODO(synk): rows with zero valid labels are undefined (torchcrf requires
    # mask[:, 0] == 1); such rows are assumed absent, as in the reference.

    nll_rows = crf_nll(padded_logits, tag_onehot, valid[:, :, None],
                       lastm[:, :, None], params["crf_start"],
                       params["crf_end"], params["crf_trans"])           # (B,1,1)
    loss = jnp.mean(nll_rows)                                            # reduction='mean'
    return loss


# ----------------------------------- main ------------------------------------

if __name__ == "__main__":
    cfg = dict(vocab_size=100, hidden=32, layers=2, heads=2, ffn=64,
               max_pos=64, type_vocab=2, num_labels=5)  # 5 = 2*2 + 1 (BIO)

    key = jax.random.PRNGKey(0)
    pkey, dkey = jax.random.split(key)
    params = init_params(pkey, cfg)

    B, S = 2, 8
    k1, k2 = jax.random.split(dkey, 2)
    input_ids = jax.random.randint(k1, (B, S), 0, cfg["vocab_size"], dtype=jnp.int32)
    token_type_ids = jnp.zeros((B, S), jnp.int32)
    attention_mask = jnp.ones((B, S), jnp.int32)
    labels = jax.random.randint(k2, (B, S), 0, cfg["num_labels"], dtype=jnp.int32)
    labels = labels.at[:, 0].set(-100).at[:, -1].set(-100)   # special tokens ignored

    fwd = jax.jit(lambda p, ids, tt, am, lb: forward(p, cfg, ids, tt, am, lb))
    loss = fwd(params, input_ids, token_type_ids, attention_mask, labels)
    jax.block_until_ready(loss)
    assert jnp.isfinite(loss), "non-finite CRF loss"
    print("KERNEL_OK")
</pallas_src>

<mosaic_0001>
module attributes {stable_mosaic.version = 11 : i64} {
  func.func @_ln_kernel(%arg0: i32, %arg1: memref<16x32xf32, #tpu.memory_space<vmem>>, %arg2: memref<1x32xf32, #tpu.memory_space<vmem>>, %arg3: memref<1x32xf32, #tpu.memory_space<vmem>>, %arg4: memref<16x32xbf16, #tpu.memory_space<vmem>>) attributes {dimension_semantics = [#tpu.dimension_semantics<parallel>], iteration_bounds = array<i64: 1>, scalar_prefetch = 0 : i64, scratch_operands = 0 : i64, tpu.core_type = #tpu.core_type<tc>, window_params = [{transform_indices = @transform_0, window_bounds = array<i64: 16, 32>}, {pipeline_mode = #tpu.pipeline_mode<synchronous>, transform_indices = @transform_1, window_bounds = array<i64: 1, 32>}, {pipeline_mode = #tpu.pipeline_mode<synchronous>, transform_indices = @transform_2, window_bounds = array<i64: 1, 32>}, {transform_indices = @transform_3, window_bounds = array<i64: 16, 32>}]} {
    %c0 = arith.constant 0 : index
    %c0_0 = arith.constant 0 : index
    %0 = vector.load %arg1[%c0, %c0_0] : memref<16x32xf32, #tpu.memory_space<vmem>>, vector<16x32xf32>
    %cst = arith.constant dense<0.000000e+00> : vector<16xf32>
    %1 = vector.multi_reduction <add>, %0, %cst [1] : vector<16x32xf32> to vector<16xf32>
    %2 = vector.shape_cast %1 : vector<16xf32> to vector<16x1xf32>
    %cst_1 = arith.constant 3.200000e+01 : f32
    %3 = vector.broadcast %cst_1 : f32 to vector<16x1xf32>
    %4 = arith.divf %2, %3 : vector<16x1xf32>
    %5 = vector.broadcast %4 : vector<16x1xf32> to vector<16x32xf32>
    %6 = arith.subf %0, %5 : vector<16x32xf32>
    %7 = arith.mulf %6, %6 : vector<16x32xf32>
    %cst_2 = arith.constant dense<0.000000e+00> : vector<16xf32>
    %8 = vector.multi_reduction <add>, %7, %cst_2 [1] : vector<16x32xf32> to vector<16xf32>
    %9 = vector.shape_cast %8 : vector<16xf32> to vector<16x1xf32>
    %cst_3 = arith.constant 3.200000e+01 : f32
    %10 = vector.broadcast %cst_3 : f32 to vector<16x1xf32>
    %11 = arith.divf %9, %10 : vector<16x1xf32>
    %cst_4 = arith.constant 9.99999996E-13 : f32
    %12 = vector.broadcast %cst_4 : f32 to vector<16x1xf32>
    %13 = arith.addf %11, %12 : vector<16x1xf32>
    %14 = math.rsqrt %13 : vector<16x1xf32>
    %15 = vector.broadcast %14 : vector<16x1xf32> to vector<16x32xf32>
    %16 = arith.mulf %6, %15 : vector<16x32xf32>
    %c0_5 = arith.constant 0 : index
    %c0_6 = arith.constant 0 : index
    %17 = vector.load %arg2[%c0_5, %c0_6] : memref<1x32xf32, #tpu.memory_space<vmem>>, vector<1x32xf32>
    %18 = vector.broadcast %17 : vector<1x32xf32> to vector<16x32xf32>
    %19 = arith.mulf %16, %18 : vector<16x32xf32>
    %c0_7 = arith.constant 0 : index
    %c0_8 = arith.constant 0 : index
    %20 = vector.load %arg3[%c0_7, %c0_8] : memref<1x32xf32, #tpu.memory_space<vmem>>, vector<1x32xf32>
    %21 = vector.broadcast %20 : vector<1x32xf32> to vector<16x32xf32>
    %22 = arith.addf %19, %21 : vector<16x32xf32>
    %23 = arith.truncf %22 : vector<16x32xf32> to vector<16x32xbf16>
    %c0_9 = arith.constant 0 : index
    %c0_10 = arith.constant 0 : index
    %24 = vector.load %arg4[%c0_9, %c0_10] : memref<16x32xbf16, #tpu.memory_space<vmem>>, vector<16x32xbf16>
    tpu.vector_store %arg4[%c0_9, %c0_10], %23 {strides = array<i32>} : memref<16x32xbf16, #tpu.memory_space<vmem>>, vector<16x32xbf16>,
    return
  }
  func.func @transform_0(%arg0: i32) -> (i32, i32) {
    %c0_i32 = arith.constant 0 : i32
    %c0_i32_0 = arith.constant 0 : i32
    return %arg0, %c0_i32 : i32, i32
  }
  func.func @transform_1(%arg0: i32) -> (i32, i32) {
    %c0_i32 = arith.constant 0 : i32
    %c0_i32_0 = arith.constant 0 : i32
    %c0_i32_1 = arith.constant 0 : i32
    return %c0_i32, %c0_i32_0 : i32, i32
  }
  func.func @transform_2(%arg0: i32) -> (i32, i32) {
    %c0_i32 = arith.constant 0 : i32
    %c0_i32_0 = arith.constant 0 : i32
    %c0_i32_1 = arith.constant 0 : i32
    return %c0_i32, %c0_i32_0 : i32, i32
  }
  func.func @transform_3(%arg0: i32) -> (i32, i32) {
    %c0_i32 = arith.constant 0 : i32
    %c0_i32_0 = arith.constant 0 : i32
    return %arg0, %c0_i32 : i32, i32
  }
}

module attributes {stable_mosaic.version = 11 : i64} {
  func.func @_linear_kernel(%arg0: i32, %arg1: i32, %arg2: memref<16x32xbf16, #tpu.memory_space<vmem>>, %arg3: memref<32x96xbf16, #tpu.memory_space<vmem>>, %arg4: memref<1x96xf32, #tpu.memory_space<vmem>>, %arg5: memref<16x96xbf16, #tpu.memory_space<vmem>>) attributes {dimension_semantics = [#tpu.dimension_semantics<parallel>, #tpu.dimension_semantics<parallel>], iteration_bounds = array<i64: 1, 1>, scalar_prefetch = 0 : i64, scratch_operands = 0 : i64, tpu.core_type = #tpu.core_type<tc>, window_params = [{transform_indices = @transform_0, window_bounds = array<i64: 16, 32>}, {transform_indices = @transform_1, window_bounds = array<i64: 32, 96>}, {transform_indices = @transform_2, window_bounds = array<i64: 1, 96>}, {transform_indices = @transform_3, window_bounds = array<i64: 16, 96>}]} {
    %c0 = arith.constant 0 : index
    %c0_0 = arith.constant 0 : index
    %0 = vector.load %arg2[%c0, %c0_0] : memref<16x32xbf16, #tpu.memory_space<vmem>>, vector<16x32xbf16>
    %c0_1 = arith.constant 0 : index
    %c0_2 = arith.constant 0 : index
    %1 = vector.load %arg3[%c0_1, %c0_2] : memref<32x96xbf16, #tpu.memory_space<vmem>>, vector<32x96xbf16>
    %cst = arith.constant dense<0.000000e+00> : vector<16x96xf32>
    %2 = tpu.matmul %0, %1, %cst {dimension_numbers = #tpu.dot_dimension_numbers<[1], [0], [0], [1], [0, 0, 1, 1], [], []>} : vector<16x32xbf16>, vector<32x96xbf16>, vector<16x96xf32> -> vector<16x96xf32>
    %c0_3 = arith.constant 0 : index
    %c0_4 = arith.constant 0 : index
    %3 = vector.load %arg4[%c0_3, %c0_4] : memref<1x96xf32, #tpu.memory_space<vmem>>, vector<1x96xf32>
    %4 = vector.broadcast %3 : vector<1x96xf32> to vector<16x96xf32>
    %5 = arith.addf %2, %4 : vector<16x96xf32>
    %6 = arith.truncf %5 : vector<16x96xf32> to vector<16x96xbf16>
    %c0_5 = arith.constant 0 : index
    %c0_6 = arith.constant 0 : index
    %7 = vector.load %arg5[%c0_5, %c0_6] : memref<16x96xbf16, #tpu.memory_space<vmem>>, vector<16x96xbf16>
    tpu.vector_store %arg5[%c0_5, %c0_6], %6 {strides = array<i32>} : memref<16x96xbf16, #tpu.memory_space<vmem>>, vector<16x96xbf16>,
    return
  }
  func.func @transform_0(%arg0: i32, %arg1: i32) -> (i32, i32) {
    %c0_i32 = arith.constant 0 : i32
    %c0_i32_0 = arith.constant 0 : i32
    return %arg1, %c0_i32 : i32, i32
  }
  func.func @transform_1(%arg0: i32, %arg1: i32) -> (i32, i32) {
    %c0_i32 = arith.constant 0 : i32
    %c0_i32_0 = arith.constant 0 : i32
    return %c0_i32, %arg0 : i32, i32
  }
  func.func @transform_2(%arg0: i32, %arg1: i32) -> (i32, i32) {
    %c0_i32 = arith.constant 0 : i32
    %c0_i32_0 = arith.constant 0 : i32
    return %c0_i32, %arg0 : i32, i32
  }
  func.func @transform_3(%arg0: i32, %arg1: i32) -> (i32, i32) {
    %c0_i32 = arith.constant 0 : i32
    return %arg1, %arg0 : i32, i32
  }
}

module attributes {stable_mosaic.version = 11 : i64} {
  func.func @_attn_kernel(%arg0: i32, %arg1: memref<1x8x96xbf16, #tpu.memory_space<vmem>>, %arg2: memref<1x1x8xf32, #tpu.memory_space<vmem>>, %arg3: memref<1x8x32xbf16, #tpu.memory_space<vmem>>) attributes {dimension_semantics = [#tpu.dimension_semantics<parallel>], iteration_bounds = array<i64: 2>, scalar_prefetch = 0 : i64, scratch_operands = 0 : i64, tpu.core_type = #tpu.core_type<tc>, window_params = [{transform_indices = @transform_0, window_bounds = array<i64: 1, 8, 96>}, {transform_indices = @transform_1, window_bounds = array<i64: 1, 1, 8>}, {transform_indices = @transform_2, window_bounds = array<i64: 1, 8, 32>}]} {
    %c0 = arith.constant 0 : index
    %c0_0 = arith.constant 0 : index
    %c0_1 = arith.constant 0 : index
    %0 = vector.load %arg1[%c0, %c0_0, %c0_1] : memref<1x8x96xbf16, #tpu.memory_space<vmem>>, vector<1x8x96xbf16>
    %1 = vector.shape_cast %0 : vector<1x8x96xbf16> to vector<8x96xbf16>
    %c0_2 = arith.constant 0 : index
    %c0_3 = arith.constant 0 : index
    %c0_4 = arith.constant 0 : index
    %2 = vector.load %arg2[%c0_2, %c0_3, %c0_4] : memref<1x1x8xf32, #tpu.memory_space<vmem>>, vector<1x1x8xf32>
    %3 = vector.shape_cast %2 : vector<1x1x8xf32> to vector<1x8xf32>
    %4 = vector.extract_strided_slice %1 {offsets = [0, 0], sizes = [8, 16], strides = [1, 1]} : vector<8x96xbf16> to vector<8x16xbf16>
    %5 = vector.extract_strided_slice %1 {offsets = [0, 32], sizes = [8, 16], strides = [1, 1]} : vector<8x96xbf16> to vector<8x16xbf16>
    %6 = vector.extract_strided_slice %1 {offsets = [0, 64], sizes = [8, 16], strides = [1, 1]} : vector<8x96xbf16> to vector<8x16xbf16>
    %cst = arith.constant dense<0.000000e+00> : vector<8x8xf32>
    %7 = tpu.matmul %4, %5, %cst {dimension_numbers = #tpu.dot_dimension_numbers<[1], [1], [0], [0], [0, 0, 1, 0], [], []>} : vector<8x16xbf16>, vector<8x16xbf16>, vector<8x8xf32> -> vector<8x8xf32>
    %cst_5 = arith.constant 2.500000e-01 : f32
    %8 = vector.broadcast %cst_5 : f32 to vector<8x8xf32>
    %9 = arith.mulf %7, %8 : vector<8x8xf32>
    %10 = vector.broadcast %3 : vector<1x8xf32> to vector<8x8xf32>
    %11 = arith.addf %9, %10 : vector<8x8xf32>
    %cst_6 = arith.constant dense<0xFF800000> : vector<8xf32>
    %12 = vector.multi_reduction <maximumf>, %11, %cst_6 [1] : vector<8x8xf32> to vector<8xf32>
    %13 = vector.shape_cast %12 : vector<8xf32> to vector<8x1xf32>
    %14 = vector.broadcast %13 : vector<8x1xf32> to vector<8x8xf32>
    %15 = arith.subf %11, %14 : vector<8x8xf32>
    %16 = math.exp %15 : vector<8x8xf32>
    %cst_7 = arith.constant dense<0.000000e+00> : vector<8xf32>
    %17 = vector.multi_reduction <add>, %16, %cst_7 [1] : vector<8x8xf32> to vector<8xf32>
    %18 = vector.shape_cast %17 : vector<8xf32> to vector<8x1xf32>
    %19 = tpu.reciprocal %18 {approx = true} : vector<8x1xf32> -> vector<8x1xf32>
    %20 = vector.broadcast %19 : vector<8x1xf32> to vector<8x8xf32>
    %21 = arith.mulf %16, %20 : vector<8x8xf32>
    %22 = arith.truncf %21 : vector<8x8xf32> to vector<8x8xbf16>
    %cst_8 = arith.constant dense<0.000000e+00> : vector<8x16xf32>
    %23 = tpu.matmul %22, %6, %cst_8 {dimension_numbers = #tpu.dot_dimension_numbers<[1], [0], [0], [1], [0, 0, 1, 1], [], []>} : vector<8x8xbf16>, vector<8x16xbf16>, vector<8x16xf32> -> vector<8x16xf32>
    %24 = vector.extract_strided_slice %1 {offsets = [0, 16], sizes = [8, 16], strides = [1, 1]} : vector<8x96xbf16> to vector<8x16xbf16>
    %25 = vector.extract_strided_slice %1 {offsets = [0, 48], sizes = [8, 16], strides = [1, 1]} : vector<8x96xbf16> to vector<8x16xbf16>
    %26 = vector.extract_strided_slice %1 {offsets = [0, 80], sizes = [8, 16], strides = [1, 1]} : vector<8x96xbf16> to vector<8x16xbf16>
    %cst_9 = arith.constant dense<0.000000e+00> : vector<8x8xf32>
    %27 = tpu.matmul %24, %25, %cst_9 {dimension_numbers = #tpu.dot_dimension_numbers<[1], [1], [0], [0], [0, 0, 1, 0], [], []>} : vector<8x16xbf16>, vector<8x16xbf16>, vector<8x8xf32> -> vector<8x8xf32>
    %cst_10 = arith.constant 2.500000e-01 : f32
    %28 = vector.broadcast %cst_10 : f32 to vector<8x8xf32>
    %29 = arith.mulf %27, %28 : vector<8x8xf32>
    %30 = vector.broadcast %3 : vector<1x8xf32> to vector<8x8xf32>
    %31 = arith.addf %29, %30 : vector<8x8xf32>
    %cst_11 = arith.constant dense<0xFF800000> : vector<8xf32>
    %32 = vector.multi_reduction <maximumf>, %31, %cst_11 [1] : vector<8x8xf32> to vector<8xf32>
    %33 = vector.shape_cast %32 : vector<8xf32> to vector<8x1xf32>
    %34 = vector.broadcast %33 : vector<8x1xf32> to vector<8x8xf32>
    %35 = arith.subf %31, %34 : vector<8x8xf32>
    %36 = math.exp %35 : vector<8x8xf32>
    %cst_12 = arith.constant dense<0.000000e+00> : vector<8xf32>
    %37 = vector.multi_reduction <add>, %36, %cst_12 [1] : vector<8x8xf32> to vector<8xf32>
    %38 = vector.shape_cast %37 : vector<8xf32> to vector<8x1xf32>
    %39 = tpu.reciprocal %38 {approx = true} : vector<8x1xf32> -> vector<8x1xf32>
    %40 = vector.broadcast %39 : vector<8x1xf32> to vector<8x8xf32>
    %41 = arith.mulf %36, %40 : vector<8x8xf32>
    %42 = arith.truncf %41 : vector<8x8xf32> to vector<8x8xbf16>
    %cst_13 = arith.constant dense<0.000000e+00> : vector<8x16xf32>
    %43 = tpu.matmul %42, %26, %cst_13 {dimension_numbers = #tpu.dot_dimension_numbers<[1], [0], [0], [1], [0, 0, 1, 1], [], []>} : vector<8x8xbf16>, vector<8x16xbf16>, vector<8x16xf32> -> vector<8x16xf32>
    %44 = tpu.concatenate %23, %43 in 1 : vector<8x16xf32>, vector<8x16xf32> -> vector<8x32xf32>
    %45 = arith.truncf %44 : vector<8x32xf32> to vector<8x32xbf16>
    %c0_14 = arith.constant 0 : index
    %c0_15 = arith.constant 0 : index
    %c0_16 = arith.constant 0 : index
    %46 = vector.load %arg3[%c0_14, %c0_15, %c0_16] : memref<1x8x32xbf16, #tpu.memory_space<vmem>>, vector<1x8x32xbf16>
    %47 = vector.shape_cast %46 : vector<1x8x32xbf16> to vector<8x32xbf16>
    %48 = vector.shape_cast %45 : vector<8x32xbf16> to vector<1x8x32xbf16>
    tpu.vector_store %arg3[%c0_14, %c0_15, %c0_16], %48 {strides = array<i32>} : memref<1x8x32xbf16, #tpu.memory_space<vmem>>, vector<1x8x32xbf16>,
    return
  }
  func.func @transform_0(%arg0: i32) -> (i32, i32, i32) {
    %c0_i32 = arith.constant 0 : i32
    %c0_i32_0 = arith.constant 0 : i32
    %c0_i32_1 = arith.constant 0 : i32
    return %arg0, %c0_i32, %c0_i32_0 : i32, i32, i32
  }
  func.func @transform_1(%arg0: i32) -> (i32, i32, i32) {
    %c0_i32 = arith.constant 0 : i32
    %c0_i32_0 = arith.constant 0 : i32
    %c0_i32_1 = arith.constant 0 : i32
    return %arg0, %c0_i32, %c0_i32_0 : i32, i32, i32
  }
  func.func @transform_2(%arg0: i32) -> (i32, i32, i32) {
    %c0_i32 = arith.constant 0 : i32
    %c0_i32_0 = arith.constant 0 : i32
    %c0_i32_1 = arith.constant 0 : i32
    return %arg0, %c0_i32, %c0_i32_0 : i32, i32, i32
  }
}

module attributes {stable_mosaic.version = 11 : i64} {
  func.func @_linear_res_ln_kernel(%arg0: i32, %arg1: memref<16x32xbf16, #tpu.memory_space<vmem>>, %arg2: memref<32x32xbf16, #tpu.memory_space<vmem>>, %arg3: memref<1x32xf32, #tpu.memory_space<vmem>>, %arg4: memref<16x32xbf16, #tpu.memory_space<vmem>>, %arg5: memref<1x32xf32, #tpu.memory_space<vmem>>, %arg6: memref<1x32xf32, #tpu.memory_space<vmem>>, %arg7: memref<16x32xbf16, #tpu.memory_space<vmem>>) attributes {dimension_semantics = [#tpu.dimension_semantics<parallel>], iteration_bounds = array<i64: 1>, scalar_prefetch = 0 : i64, scratch_operands = 0 : i64, tpu.core_type = #tpu.core_type<tc>, window_params = [{transform_indices = @transform_0, window_bounds = array<i64: 16, 32>}, {pipeline_mode = #tpu.pipeline_mode<synchronous>, transform_indices = @transform_1, window_bounds = array<i64: 32, 32>}, {pipeline_mode = #tpu.pipeline_mode<synchronous>, transform_indices = @transform_2, window_bounds = array<i64: 1, 32>}, {transform_indices = @transform_3, window_bounds = array<i64: 16, 32>}, {pipeline_mode = #tpu.pipeline_mode<synchronous>, transform_indices = @transform_4, window_bounds = array<i64: 1, 32>}, {pipeline_mode = #tpu.pipeline_mode<synchronous>, transform_indices = @transform_5, window_bounds = array<i64: 1, 32>}, {transform_indices = @transform_6, window_bounds = array<i64: 16, 32>}]} {
    %c0 = arith.constant 0 : index
    %c0_0 = arith.constant 0 : index
    %0 = vector.load %arg1[%c0, %c0_0] : memref<16x32xbf16, #tpu.memory_space<vmem>>, vector<16x32xbf16>
    %c0_1 = arith.constant 0 : index
    %c0_2 = arith.constant 0 : index
    %1 = vector.load %arg2[%c0_1, %c0_2] : memref<32x32xbf16, #tpu.memory_space<vmem>>, vector<32x32xbf16>
    %cst = arith.constant dense<0.000000e+00> : vector<16x32xf32>
    %2 = tpu.matmul %0, %1, %cst {dimension_numbers = #tpu.dot_dimension_numbers<[1], [0], [0], [1], [0, 0, 1, 1], [], []>} : vector<16x32xbf16>, vector<32x32xbf16>, vector<16x32xf32> -> vector<16x32xf32>
    %c0_3 = arith.constant 0 : index
    %c0_4 = arith.constant 0 : index
    %3 = vector.load %arg3[%c0_3, %c0_4] : memref<1x32xf32, #tpu.memory_space<vmem>>, vector<1x32xf32>
    %4 = vector.broadcast %3 : vector<1x32xf32> to vector<16x32xf32>
    %5 = arith.addf %2, %4 : vector<16x32xf32>
    %c0_5 = arith.constant 0 : index
    %c0_6 = arith.constant 0 : index
    %6 = vector.load %arg4[%c0_5, %c0_6] : memref<16x32xbf16, #tpu.memory_space<vmem>>, vector<16x32xbf16>
    %7 = arith.extf %6 : vector<16x32xbf16> to vector<16x32xf32>
    %8 = arith.addf %5, %7 : vector<16x32xf32>
    %cst_7 = arith.constant dense<0.000000e+00> : vector<16xf32>
    %9 = vector.multi_reduction <add>, %8, %cst_7 [1] : vector<16x32xf32> to vector<16xf32>
    %10 = vector.shape_cast %9 : vector<16xf32> to vector<16x1xf32>
    %cst_8 = arith.constant 3.200000e+01 : f32
    %11 = vector.broadcast %cst_8 : f32 to vector<16x1xf32>
    %12 = arith.divf %10, %11 : vector<16x1xf32>
    %13 = vector.broadcast %12 : vector<16x1xf32> to vector<16x32xf32>
    %14 = arith.subf %8, %13 : vector<16x32xf32>
    %15 = arith.mulf %14, %14 : vector<16x32xf32>
    %cst_9 = arith.constant dense<0.000000e+00> : vector<16xf32>
    %16 = vector.multi_reduction <add>, %15, %cst_9 [1] : vector<16x32xf32> to vector<16xf32>
    %17 = vector.shape_cast %16 : vector<16xf32> to vector<16x1xf32>
    %cst_10 = arith.constant 3.200000e+01 : f32
    %18 = vector.broadcast %cst_10 : f32 to vector<16x1xf32>
    %19 = arith.divf %17, %18 : vector<16x1xf32>
    %cst_11 = arith.constant 9.99999996E-13 : f32
    %20 = vector.broadcast %cst_11 : f32 to vector<16x1xf32>
    %21 = arith.addf %19, %20 : vector<16x1xf32>
    %22 = math.rsqrt %21 : vector<16x1xf32>
    %23 = vector.broadcast %22 : vector<16x1xf32> to vector<16x32xf32>
    %24 = arith.mulf %14, %23 : vector<16x32xf32>
    %c0_12 = arith.constant 0 : index
    %c0_13 = arith.constant 0 : index
    %25 = vector.load %arg5[%c0_12, %c0_13] : memref<1x32xf32, #tpu.memory_space<vmem>>, vector<1x32xf32>
    %26 = vector.broadcast %25 : vector<1x32xf32> to vector<16x32xf32>
    %27 = arith.mulf %24, %26 : vector<16x32xf32>
    %c0_14 = arith.constant 0 : index
    %c0_15 = arith.constant 0 : index
    %28 = vector.load %arg6[%c0_14, %c0_15] : memref<1x32xf32, #tpu.memory_space<vmem>>, vector<1x32xf32>
    %29 = vector.broadcast %28 : vector<1x32xf32> to vector<16x32xf32>
    %30 = arith.addf %27, %29 : vector<16x32xf32>
    %31 = arith.truncf %30 : vector<16x32xf32> to vector<16x32xbf16>
    %c0_16 = arith.constant 0 : index
    %c0_17 = arith.constant 0 : index
    %32 = vector.load %arg7[%c0_16, %c0_17] : memref<16x32xbf16, #tpu.memory_space<vmem>>, vector<16x32xbf16>
    tpu.vector_store %arg7[%c0_16, %c0_17], %31 {strides = array<i32>} : memref<16x32xbf16, #tpu.memory_space<vmem>>, vector<16x32xbf16>,
    return
  }
  func.func @transform_0(%arg0: i32) -> (i32, i32) {
    %c0_i32 = arith.constant 0 : i32
    %c0_i32_0 = arith.constant 0 : i32
    return %arg0, %c0_i32 : i32, i32
  }
  func.func @transform_1(%arg0: i32) -> (i32, i32) {
    %c0_i32 = arith.constant 0 : i32
    %c0_i32_0 = arith.constant 0 : i32
    %c0_i32_1 = arith.constant 0 : i32
    return %c0_i32, %c0_i32_0 : i32, i32
  }
  func.func @transform_2(%arg0: i32) -> (i32, i32) {
    %c0_i32 = arith.constant 0 : i32
    %c0_i32_0 = arith.constant 0 : i32
    %c0_i32_1 = arith.constant 0 : i32
    return %c0_i32, %c0_i32_0 : i32, i32
  }
  func.func @transform_3(%arg0: i32) -> (i32, i32) {
    %c0_i32 = arith.constant 0 : i32
    %c0_i32_0 = arith.constant 0 : i32
    return %arg0, %c0_i32 : i32, i32
  }
  func.func @transform_4(%arg0: i32) -> (i32, i32) {
    %c0_i32 = arith.constant 0 : i32
    %c0_i32_0 = arith.constant 0 : i32
    %c0_i32_1 = arith.constant 0 : i32
    return %c0_i32, %c0_i32_0 : i32, i32
  }
  func.func @transform_5(%arg0: i32) -> (i32, i32) {
    %c0_i32 = arith.constant 0 : i32
    %c0_i32_0 = arith.constant 0 : i32
    %c0_i32_1 = arith.constant 0 : i32
    return %c0_i32, %c0_i32_0 : i32, i32
  }
  func.func @transform_6(%arg0: i32) -> (i32, i32) {
    %c0_i32 = arith.constant 0 : i32
    %c0_i32_0 = arith.constant 0 : i32
    return %arg0, %c0_i32 : i32, i32
  }
}

module attributes {stable_mosaic.version = 11 : i64} {
  func.func @_linear_kernel(%arg0: i32, %arg1: i32, %arg2: memref<16x32xbf16, #tpu.memory_space<vmem>>, %arg3: memref<32x64xbf16, #tpu.memory_space<vmem>>, %arg4: memref<1x64xf32, #tpu.memory_space<vmem>>, %arg5: memref<16x64xbf16, #tpu.memory_space<vmem>>) attributes {dimension_semantics = [#tpu.dimension_semantics<parallel>, #tpu.dimension_semantics<parallel>], iteration_bounds = array<i64: 1, 1>, scalar_prefetch = 0 : i64, scratch_operands = 0 : i64, tpu.core_type = #tpu.core_type<tc>, window_params = [{transform_indices = @transform_0, window_bounds = array<i64: 16, 32>}, {transform_indices = @transform_1, window_bounds = array<i64: 32, 64>}, {transform_indices = @transform_2, window_bounds = array<i64: 1, 64>}, {transform_indices = @transform_3, window_bounds = array<i64: 16, 64>}]} {
    %c0 = arith.constant 0 : index
    %c0_0 = arith.constant 0 : index
    %0 = vector.load %arg2[%c0, %c0_0] : memref<16x32xbf16, #tpu.memory_space<vmem>>, vector<16x32xbf16>
    %c0_1 = arith.constant 0 : index
    %c0_2 = arith.constant 0 : index
    %1 = vector.load %arg3[%c0_1, %c0_2] : memref<32x64xbf16, #tpu.memory_space<vmem>>, vector<32x64xbf16>
    %cst = arith.constant dense<0.000000e+00> : vector<16x64xf32>
    %2 = tpu.matmul %0, %1, %cst {dimension_numbers = #tpu.dot_dimension_numbers<[1], [0], [0], [1], [0, 0, 1, 1], [], []>} : vector<16x32xbf16>, vector<32x64xbf16>, vector<16x64xf32> -> vector<16x64xf32>
    %c0_3 = arith.constant 0 : index
    %c0_4 = arith.constant 0 : index
    %3 = vector.load %arg4[%c0_3, %c0_4] : memref<1x64xf32, #tpu.memory_space<vmem>>, vector<1x64xf32>
    %4 = vector.broadcast %3 : vector<1x64xf32> to vector<16x64xf32>
    %5 = arith.addf %2, %4 : vector<16x64xf32>
    %6 = arith.mulf %5, %5 : vector<16x64xf32>
    %7 = arith.mulf %5, %6 : vector<16x64xf32>
    %cst_5 = arith.constant 4.471500e-02 : f32
    %8 = vector.broadcast %cst_5 : f32 to vector<16x64xf32>
    %9 = arith.mulf %8, %7 : vector<16x64xf32>
    %10 = arith.addf %5, %9 : vector<16x64xf32>
    %cst_6 = arith.constant 0.797884583 : f32
    %11 = vector.broadcast %cst_6 : f32 to vector<16x64xf32>
    %12 = arith.mulf %11, %10 : vector<16x64xf32>
    %13 = math.tanh %12 : vector<16x64xf32>
    %cst_7 = arith.constant 1.000000e+00 : f32
    %14 = vector.broadcast %cst_7 : f32 to vector<16x64xf32>
    %15 = arith.addf %14, %13 : vector<16x64xf32>
    %cst_8 = arith.constant 5.000000e-01 : f32
    %16 = vector.broadcast %cst_8 : f32 to vector<16x64xf32>
    %17 = arith.mulf %16, %15 : vector<16x64xf32>
    %18 = arith.mulf %5, %17 : vector<16x64xf32>
    %19 = arith.truncf %18 : vector<16x64xf32> to vector<16x64xbf16>
    %c0_9 = arith.constant 0 : index
    %c0_10 = arith.constant 0 : index
    %20 = vector.load %arg5[%c0_9, %c0_10] : memref<16x64xbf16, #tpu.memory_space<vmem>>, vector<16x64xbf16>
    tpu.vector_store %arg5[%c0_9, %c0_10], %19 {strides = array<i32>} : memref<16x64xbf16, #tpu.memory_space<vmem>>, vector<16x64xbf16>,
    return
  }
  func.func @transform_0(%arg0: i32, %arg1: i32) -> (i32, i32) {
    %c0_i32 = arith.constant 0 : i32
    %c0_i32_0 = arith.constant 0 : i32
    return %arg1, %c0_i32 : i32, i32
  }
  func.func @transform_1(%arg0: i32, %arg1: i32) -> (i32, i32) {
    %c0_i32 = arith.constant 0 : i32
    %c0_i32_0 = arith.constant 0 : i32
    return %c0_i32, %arg0 : i32, i32
  }
  func.func @transform_2(%arg0: i32, %arg1: i32) -> (i32, i32) {
    %c0_i32 = arith.constant 0 : i32
    %c0_i32_0 = arith.constant 0 : i32
    return %c0_i32, %arg0 : i32, i32
  }
  func.func @transform_3(%arg0: i32, %arg1: i32) -> (i32, i32) {
    %c0_i32 = arith.constant 0 : i32
    return %arg1, %arg0 : i32, i32
  }
}

module attributes {stable_mosaic.version = 11 : i64} {
  func.func @_linear_res_ln_kernel(%arg0: i32, %arg1: memref<16x64xbf16, #tpu.memory_space<vmem>>, %arg2: memref<64x32xbf16, #tpu.memory_space<vmem>>, %arg3: memref<1x32xf32, #tpu.memory_space<vmem>>, %arg4: memref<16x32xbf16, #tpu.memory_space<vmem>>, %arg5: memref<1x32xf32, #tpu.memory_space<vmem>>, %arg6: memref<1x32xf32, #tpu.memory_space<vmem>>, %arg7: memref<16x32xbf16, #tpu.memory_space<vmem>>) attributes {dimension_semantics = [#tpu.dimension_semantics<parallel>], iteration_bounds = array<i64: 1>, scalar_prefetch = 0 : i64, scratch_operands = 0 : i64, tpu.core_type = #tpu.core_type<tc>, window_params = [{transform_indices = @transform_0, window_bounds = array<i64: 16, 64>}, {pipeline_mode = #tpu.pipeline_mode<synchronous>, transform_indices = @transform_1, window_bounds = array<i64: 64, 32>}, {pipeline_mode = #tpu.pipeline_mode<synchronous>, transform_indices = @transform_2, window_bounds = array<i64: 1, 32>}, {transform_indices = @transform_3, window_bounds = array<i64: 16, 32>}, {pipeline_mode = #tpu.pipeline_mode<synchronous>, transform_indices = @transform_4, window_bounds = array<i64: 1, 32>}, {pipeline_mode = #tpu.pipeline_mode<synchronous>, transform_indices = @transform_5, window_bounds = array<i64: 1, 32>}, {transform_indices = @transform_6, window_bounds = array<i64: 16, 32>}]} {
    %c0 = arith.constant 0 : index
    %c0_0 = arith.constant 0 : index
    %0 = vector.load %arg1[%c0, %c0_0] : memref<16x64xbf16, #tpu.memory_space<vmem>>, vector<16x64xbf16>
    %c0_1 = arith.constant 0 : index
    %c0_2 = arith.constant 0 : index
    %1 = vector.load %arg2[%c0_1, %c0_2] : memref<64x32xbf16, #tpu.memory_space<vmem>>, vector<64x32xbf16>
    %cst = arith.constant dense<0.000000e+00> : vector<16x32xf32>
    %2 = tpu.matmul %0, %1, %cst {dimension_numbers = #tpu.dot_dimension_numbers<[1], [0], [0], [1], [0, 0, 1, 1], [], []>} : vector<16x64xbf16>, vector<64x32xbf16>, vector<16x32xf32> -> vector<16x32xf32>
    %c0_3 = arith.constant 0 : index
    %c0_4 = arith.constant 0 : index
    %3 = vector.load %arg3[%c0_3, %c0_4] : memref<1x32xf32, #tpu.memory_space<vmem>>, vector<1x32xf32>
    %4 = vector.broadcast %3 : vector<1x32xf32> to vector<16x32xf32>
    %5 = arith.addf %2, %4 : vector<16x32xf32>
    %c0_5 = arith.constant 0 : index
    %c0_6 = arith.constant 0 : index
    %6 = vector.load %arg4[%c0_5, %c0_6] : memref<16x32xbf16, #tpu.memory_space<vmem>>, vector<16x32xbf16>
    %7 = arith.extf %6 : vector<16x32xbf16> to vector<16x32xf32>
    %8 = arith.addf %5, %7 : vector<16x32xf32>
    %cst_7 = arith.constant dense<0.000000e+00> : vector<16xf32>
    %9 = vector.multi_reduction <add>, %8, %cst_7 [1] : vector<16x32xf32> to vector<16xf32>
    %10 = vector.shape_cast %9 : vector<16xf32> to vector<16x1xf32>
    %cst_8 = arith.constant 3.200000e+01 : f32
    %11 = vector.broadcast %cst_8 : f32 to vector<16x1xf32>
    %12 = arith.divf %10, %11 : vector<16x1xf32>
    %13 = vector.broadcast %12 : vector<16x1xf32> to vector<16x32xf32>
    %14 = arith.subf %8, %13 : vector<16x32xf32>
    %15 = arith.mulf %14, %14 : vector<16x32xf32>
    %cst_9 = arith.constant dense<0.000000e+00> : vector<16xf32>
    %16 = vector.multi_reduction <add>, %15, %cst_9 [1] : vector<16x32xf32> to vector<16xf32>
    %17 = vector.shape_cast %16 : vector<16xf32> to vector<16x1xf32>
    %cst_10 = arith.constant 3.200000e+01 : f32
    %18 = vector.broadcast %cst_10 : f32 to vector<16x1xf32>
    %19 = arith.divf %17, %18 : vector<16x1xf32>
    %cst_11 = arith.constant 9.99999996E-13 : f32
    %20 = vector.broadcast %cst_11 : f32 to vector<16x1xf32>
    %21 = arith.addf %19, %20 : vector<16x1xf32>
    %22 = math.rsqrt %21 : vector<16x1xf32>
    %23 = vector.broadcast %22 : vector<16x1xf32> to vector<16x32xf32>
    %24 = arith.mulf %14, %23 : vector<16x32xf32>
    %c0_12 = arith.constant 0 : index
    %c0_13 = arith.constant 0 : index
    %25 = vector.load %arg5[%c0_12, %c0_13] : memref<1x32xf32, #tpu.memory_space<vmem>>, vector<1x32xf32>
    %26 = vector.broadcast %25 : vector<1x32xf32> to vector<16x32xf32>
    %27 = arith.mulf %24, %26 : vector<16x32xf32>
    %c0_14 = arith.constant 0 : index
    %c0_15 = arith.constant 0 : index
    %28 = vector.load %arg6[%c0_14, %c0_15] : memref<1x32xf32, #tpu.memory_space<vmem>>, vector<1x32xf32>
    %29 = vector.broadcast %28 : vector<1x32xf32> to vector<16x32xf32>
    %30 = arith.addf %27, %29 : vector<16x32xf32>
    %31 = arith.truncf %30 : vector<16x32xf32> to vector<16x32xbf16>
    %c0_16 = arith.constant 0 : index
    %c0_17 = arith.constant 0 : index
    %32 = vector.load %arg7[%c0_16, %c0_17] : memref<16x32xbf16, #tpu.memory_space<vmem>>, vector<16x32xbf16>
    tpu.vector_store %arg7[%c0_16, %c0_17], %31 {strides = array<i32>} : memref<16x32xbf16, #tpu.memory_space<vmem>>, vector<16x32xbf16>,
    return
  }
  func.func @transform_0(%arg0: i32) -> (i32, i32) {
    %c0_i32 = arith.constant 0 : i32
    %c0_i32_0 = arith.constant 0 : i32
    return %arg0, %c0_i32 : i32, i32
  }
  func.func @transform_1(%arg0: i32) -> (i32, i32) {
    %c0_i32 = arith.constant 0 : i32
    %c0_i32_0 = arith.constant 0 : i32
    %c0_i32_1 = arith.constant 0 : i32
    return %c0_i32, %c0_i32_0 : i32, i32
  }
  func.func @transform_2(%arg0: i32) -> (i32, i32) {
    %c0_i32 = arith.constant 0 : i32
    %c0_i32_0 = arith.constant 0 : i32
    %c0_i32_1 = arith.constant 0 : i32
    return %c0_i32, %c0_i32_0 : i32, i32
  }
  func.func @transform_3(%arg0: i32) -> (i32, i32) {
    %c0_i32 = arith.constant 0 : i32
    %c0_i32_0 = arith.constant 0 : i32
    return %arg0, %c0_i32 : i32, i32
  }
  func.func @transform_4(%arg0: i32) -> (i32, i32) {
    %c0_i32 = arith.constant 0 : i32
    %c0_i32_0 = arith.constant 0 : i32
    %c0_i32_1 = arith.constant 0 : i32
    return %c0_i32, %c0_i32_0 : i32, i32
  }
  func.func @transform_5(%arg0: i32) -> (i32, i32) {
    %c0_i32 = arith.constant 0 : i32
    %c0_i32_0 = arith.constant 0 : i32
    %c0_i32_1 = arith.constant 0 : i32
    return %c0_i32, %c0_i32_0 : i32, i32
  }
  func.func @transform_6(%arg0: i32) -> (i32, i32) {
    %c0_i32 = arith.constant 0 : i32
    %c0_i32_0 = arith.constant 0 : i32
    return %arg0, %c0_i32 : i32, i32
  }
}

module attributes {stable_mosaic.version = 11 : i64} {
  func.func @_linear_kernel(%arg0: i32, %arg1: i32, %arg2: memref<16x32xbf16, #tpu.memory_space<vmem>>, %arg3: memref<32x128xbf16, #tpu.memory_space<vmem>>, %arg4: memref<1x128xf32, #tpu.memory_space<vmem>>, %arg5: memref<16x128xf32, #tpu.memory_space<vmem>>) attributes {dimension_semantics = [#tpu.dimension_semantics<parallel>, #tpu.dimension_semantics<parallel>], iteration_bounds = array<i64: 1, 1>, scalar_prefetch = 0 : i64, scratch_operands = 0 : i64, tpu.core_type = #tpu.core_type<tc>, window_params = [{transform_indices = @transform_0, window_bounds = array<i64: 16, 32>}, {transform_indices = @transform_1, window_bounds = array<i64: 32, 128>}, {transform_indices = @transform_2, window_bounds = array<i64: 1, 128>}, {transform_indices = @transform_3, window_bounds = array<i64: 16, 128>}]} {
    %c0 = arith.constant 0 : index
    %c0_0 = arith.constant 0 : index
    %0 = vector.load %arg2[%c0, %c0_0] : memref<16x32xbf16, #tpu.memory_space<vmem>>, vector<16x32xbf16>
    %c0_1 = arith.constant 0 : index
    %c0_2 = arith.constant 0 : index
    %1 = vector.load %arg3[%c0_1, %c0_2] : memref<32x128xbf16, #tpu.memory_space<vmem>>, vector<32x128xbf16>
    %cst = arith.constant dense<0.000000e+00> : vector<16x128xf32>
    %2 = tpu.matmul %0, %1, %cst {dimension_numbers = #tpu.dot_dimension_numbers<[1], [0], [0], [1], [0, 0, 1, 1], [], []>} : vector<16x32xbf16>, vector<32x128xbf16>, vector<16x128xf32> -> vector<16x128xf32>
    %c0_3 = arith.constant 0 : index
    %c0_4 = arith.constant 0 : index
    %3 = vector.load %arg4[%c0_3, %c0_4] : memref<1x128xf32, #tpu.memory_space<vmem>>, vector<1x128xf32>
    %4 = vector.broadcast %3 : vector<1x128xf32> to vector<16x128xf32>
    %5 = arith.addf %2, %4 : vector<16x128xf32>
    %c0_5 = arith.constant 0 : index
    %c0_6 = arith.constant 0 : index
    %6 = vector.load %arg5[%c0_5, %c0_6] : memref<16x128xf32, #tpu.memory_space<vmem>>, vector<16x128xf32>
    tpu.vector_store %arg5[%c0_5, %c0_6], %5 {strides = array<i32>} : memref<16x128xf32, #tpu.memory_space<vmem>>, vector<16x128xf32>,
    return
  }
  func.func @transform_0(%arg0: i32, %arg1: i32) -> (i32, i32) {
    %c0_i32 = arith.constant 0 : i32
    %c0_i32_0 = arith.constant 0 : i32
    return %arg1, %c0_i32 : i32, i32
  }
  func.func @transform_1(%arg0: i32, %arg1: i32) -> (i32, i32) {
    %c0_i32 = arith.constant 0 : i32
    %c0_i32_0 = arith.constant 0 : i32
    return %c0_i32, %arg0 : i32, i32
  }
  func.func @transform_2(%arg0: i32, %arg1: i32) -> (i32, i32) {
    %c0_i32 = arith.constant 0 : i32
    %c0_i32_0 = arith.constant 0 : i32
    return %c0_i32, %arg0 : i32, i32
  }
  func.func @transform_3(%arg0: i32, %arg1: i32) -> (i32, i32) {
    %c0_i32 = arith.constant 0 : i32
    return %arg1, %arg0 : i32, i32
  }
}

module attributes {stable_mosaic.version = 11 : i64} {
  func.func @_crf_nll_kernel(%arg0: i32, %arg1: memref<1x8x128xf32, #tpu.memory_space<vmem>>, %arg2: memref<1x8x128xf32, #tpu.memory_space<vmem>>, %arg3: memref<1x8x1xf32, #tpu.memory_space<vmem>>, %arg4: memref<1x8x1xf32, #tpu.memory_space<vmem>>, %arg5: memref<1x128xf32, #tpu.memory_space<vmem>>, %arg6: memref<1x128xf32, #tpu.memory_space<vmem>>, %arg7: memref<128x128xf32, #tpu.memory_space<vmem>>, %arg8: memref<1x1x1xf32, #tpu.memory_space<vmem>>) attributes {dimension_semantics = [#tpu.dimension_semantics<parallel>], iteration_bounds = array<i64: 2>, scalar_prefetch = 0 : i64, scratch_operands = 0 : i64, tpu.core_type = #tpu.core_type<tc>, window_params = [{transform_indices = @transform_0, window_bounds = array<i64: 1, 8, 128>}, {transform_indices = @transform_1, window_bounds = array<i64: 1, 8, 128>}, {transform_indices = @transform_2, window_bounds = array<i64: 1, 8, 1>}, {transform_indices = @transform_3, window_bounds = array<i64: 1, 8, 1>}, {pipeline_mode = #tpu.pipeline_mode<synchronous>, transform_indices = @transform_4, window_bounds = array<i64: 1, 128>}, {pipeline_mode = #tpu.pipeline_mode<synchronous>, transform_indices = @transform_5, window_bounds = array<i64: 1, 128>}, {pipeline_mode = #tpu.pipeline_mode<synchronous>, transform_indices = @transform_6, window_bounds = array<i64: 128, 128>}, {transform_indices = @transform_7, window_bounds = array<i64: 1, 1, 1>}]} {
    %c0 = arith.constant 0 : index
    %c0_0 = arith.constant 0 : index
    %c0_1 = arith.constant 0 : index
    %0 = vector.load %arg1[%c0, %c0_0, %c0_1] : memref<1x8x128xf32, #tpu.memory_space<vmem>>, vector<1x8x128xf32>
    %1 = vector.shape_cast %0 : vector<1x8x128xf32> to vector<8x128xf32>
    %c0_2 = arith.constant 0 : index
    %c0_3 = arith.constant 0 : index
    %c0_4 = arith.constant 0 : index
    %2 = vector.load %arg2[%c0_2, %c0_3, %c0_4] : memref<1x8x128xf32, #tpu.memory_space<vmem>>, vector<1x8x128xf32>
    %3 = vector.shape_cast %2 : vector<1x8x128xf32> to vector<8x128xf32>
    %c0_5 = arith.constant 0 : index
    %c0_6 = arith.constant 0 : index
    %c0_7 = arith.constant 0 : index
    %4 = vector.load %arg3[%c0_5, %c0_6, %c0_7] : memref<1x8x1xf32, #tpu.memory_space<vmem>>, vector<1x8x1xf32>
    %5 = vector.shape_cast %4 : vector<1x8x1xf32> to vector<8x1xf32>
    %c0_8 = arith.constant 0 : index
    %c0_9 = arith.constant 0 : index
    %c0_10 = arith.constant 0 : index
    %6 = vector.load %arg4[%c0_8, %c0_9, %c0_10] : memref<1x8x1xf32, #tpu.memory_space<vmem>>, vector<1x8x1xf32>
    %7 = vector.shape_cast %6 : vector<1x8x1xf32> to vector<8x1xf32>
    %c0_11 = arith.constant 0 : index
    %c0_12 = arith.constant 0 : index
    %8 = vector.load %arg5[%c0_11, %c0_12] : memref<1x128xf32, #tpu.memory_space<vmem>>, vector<1x128xf32>
    %c0_13 = arith.constant 0 : index
    %c0_14 = arith.constant 0 : index
    %9 = vector.load %arg6[%c0_13, %c0_14] : memref<1x128xf32, #tpu.memory_space<vmem>>, vector<1x128xf32>
    %c0_15 = arith.constant 0 : index
    %c0_16 = arith.constant 0 : index
    %10 = vector.load %arg7[%c0_15, %c0_16] : memref<128x128xf32, #tpu.memory_space<vmem>>, vector<128x128xf32>
    %11 = vector.extract_strided_slice %3 {offsets = [0, 0], sizes = [1, 128], strides = [1, 1]} : vector<8x128xf32> to vector<1x128xf32>
    %12 = arith.mulf %11, %8 : vector<1x128xf32>
    %cst = arith.constant dense<0.000000e+00> : vector<1xf32>
    %13 = vector.multi_reduction <add>, %12, %cst [1] : vector<1x128xf32> to vector<1xf32>
    %14 = vector.shape_cast %13 : vector<1xf32> to vector<1x1xf32>
    %15 = arith.mulf %3, %1 : vector<8x128xf32>
    %16 = vector.broadcast %5 : vector<8x1xf32> to vector<8x128xf32>
    %17 = arith.mulf %15, %16 : vector<8x128xf32>
    %18 = vector.shape_cast %17 : vector<8x128xf32> to vector<1x8x128xf32>
    %cst_17 = arith.constant dense<0.000000e+00> : vector<1xf32>
    %19 = vector.multi_reduction <add>, %18, %cst_17 [1, 2] : vector<1x8x128xf32> to vector<1xf32>
    %20 = vector.shape_cast %19 : vector<1xf32> to vector<1x1x1xf32>
    %21 = vector.extract %20[0, 0, 0] : f32 from vector<1x1x1xf32>
    %22 = vector.broadcast %21 : f32 to vector<1x1xf32>
    %23 = vector.extract_strided_slice %3 {offsets = [0, 0], sizes = [7, 128], strides = [1, 1]} : vector<8x128xf32> to vector<7x128xf32>
    %cst_18 = arith.constant dense<0.000000e+00> : vector<7x128xf32>
    %24 = tpu.matmul %23, %10, %cst_18 {dimension_numbers = #tpu.dot_dimension_numbers<[1], [0], [0], [1], [0, 0, 1, 1], [], []>} : vector<7x128xf32>, vector<128x128xf32>, vector<7x128xf32> -> vector<7x128xf32>
    %25 = vector.extract_strided_slice %3 {offsets = [1, 0], sizes = [7, 128], strides = [1, 1]} : vector<8x128xf32> to vector<7x128xf32>
    %26 = arith.mulf %24, %25 : vector<7x128xf32>
    %27 = vector.extract_strided_slice %5 {offsets = [1, 0], sizes = [7, 1], strides = [1, 1]} : vector<8x1xf32> to vector<7x1xf32>
    %28 = vector.broadcast %27 : vector<7x1xf32> to vector<7x128xf32>
    %29 = arith.mulf %26, %28 : vector<7x128xf32>
    %30 = vector.shape_cast %29 : vector<7x128xf32> to vector<1x7x128xf32>
    %cst_19 = arith.constant dense<0.000000e+00> : vector<1xf32>
    %31 = vector.multi_reduction <add>, %30, %cst_19 [1, 2] : vector<1x7x128xf32> to vector<1xf32>
    %32 = vector.shape_cast %31 : vector<1xf32> to vector<1x1x1xf32>
    %33 = vector.extract %32[0, 0, 0] : f32 from vector<1x1x1xf32>
    %34 = vector.broadcast %33 : f32 to vector<1x1xf32>
    %35 = vector.broadcast %7 : vector<8x1xf32> to vector<8x128xf32>
    %36 = arith.mulf %3, %35 : vector<8x128xf32>
    %cst_20 = arith.constant dense<0.000000e+00> : vector<128xf32>
    %37 = vector.multi_reduction <add>, %36, %cst_20 [0] : vector<8x128xf32> to vector<128xf32>
    %38 = vector.shape_cast %37 : vector<128xf32> to vector<1x128xf32>
    %39 = arith.mulf %38, %9 : vector<1x128xf32>
    %cst_21 = arith.constant dense<0.000000e+00> : vector<1xf32>
    %40 = vector.multi_reduction <add>, %39, %cst_21 [1] : vector<1x128xf32> to vector<1xf32>
    %41 = vector.shape_cast %40 : vector<1xf32> to vector<1x1xf32>
    %42 = arith.addf %14, %22 : vector<1x1xf32>
    %43 = arith.addf %42, %34 : vector<1x1xf32>
    %44 = arith.addf %43, %41 : vector<1x1xf32>
    %45 = math.exp %10 : vector<128x128xf32>
    %46 = vector.extract_strided_slice %1 {offsets = [0, 0], sizes = [1, 128], strides = [1, 1]} : vector<8x128xf32> to vector<1x128xf32>
    %47 = arith.addf %8, %46 : vector<1x128xf32>
    %c1_i32 = arith.constant 1 : i32
    %c7_i32 = arith.constant 7 : i32
    %48 = arith.addi %c1_i32, %c7_i32 : i32
    %c1_i32_22 = arith.constant 1 : i32
    %49 = scf.for %arg9 = %c1_i32 to %48 step %c1_i32_22 iter_args(%arg10 = %47) -> (vector<1x128xf32>)  : i32 {
      %c0_29 = arith.constant 0 : index
      %64 = arith.index_cast %arg9 : i32 to index
      %c0_30 = arith.constant 0 : index
      %65 = vector.load %arg1[%c0_29, %64, %c0_30] : memref<1x8x128xf32, #tpu.memory_space<vmem>>, vector<1x1x128xf32>
      %66 = vector.shape_cast %65 : vector<1x1x128xf32> to vector<1x128xf32>
      %c0_31 = arith.constant 0 : index
      %67 = arith.index_cast %arg9 : i32 to index
      %c0_32 = arith.constant 0 : index
      %68 = vector.load %arg3[%c0_31, %67, %c0_32] : memref<1x8x1xf32, #tpu.memory_space<vmem>>, vector<1x1x1xf32>
      %69 = vector.shape_cast %68 : vector<1x1x1xf32> to vector<1x1xf32>
      %cst_33 = arith.constant dense<0xFF800000> : vector<1xf32>
      %70 = vector.multi_reduction <maximumf>, %arg10, %cst_33 [1] : vector<1x128xf32> to vector<1xf32>
      %71 = vector.shape_cast %70 : vector<1xf32> to vector<1x1xf32>
      %72 = vector.broadcast %71 : vector<1x1xf32> to vector<1x128xf32>
      %73 = arith.subf %arg10, %72 : vector<1x128xf32>
      %74 = math.exp %73 : vector<1x128xf32>
      %cst_34 = arith.constant dense<0.000000e+00> : vector<1x128xf32>
      %75 = tpu.matmul %74, %45, %cst_34 {dimension_numbers = #tpu.dot_dimension_numbers<[1], [0], [0], [1], [0, 0, 1, 1], [], []>} : vector<1x128xf32>, vector<128x128xf32>, vector<1x128xf32> -> vector<1x128xf32>
      %cst_35 = arith.constant 1.000000e-30 : f32
      %76 = vector.broadcast %cst_35 : f32 to vector<1x128xf32>
      %77 = arith.maximumf %75, %76 : vector<1x128xf32>
      %78 = math.log %77 : vector<1x128xf32>
      %79 = vector.broadcast %71 : vector<1x1xf32> to vector<1x128xf32>
      %80 = arith.addf %78, %79 : vector<1x128xf32>
      %81 = arith.addf %80, %66 : vector<1x128xf32>
      %cst_36 = arith.constant 5.000000e-01 : f32
      %82 = vector.broadcast %cst_36 : f32 to vector<1x1xf32>
      %83 = arith.cmpf ogt, %69, %82 : vector<1x1xf32>
      %84 = vector.shape_cast %83 : vector<1x1xi1> to vector<1x1xi1>
      %85 = vector.broadcast %84 : vector<1x1xi1> to vector<1x128xi1>
      %86 = arith.select %85, %81, %arg10 : vector<1x128xi1>, vector<1x128xf32>
      scf.yield %86 : vector<1x128xf32>
    }
    %c7_i32_23 = arith.constant 7 : i32
    %50 = arith.addf %49, %9 : vector<1x128xf32>
    %cst_24 = arith.constant dense<0xFF800000> : vector<1xf32>
    %51 = vector.multi_reduction <maximumf>, %50, %cst_24 [1] : vector<1x128xf32> to vector<1xf32>
    %52 = vector.shape_cast %51 : vector<1xf32> to vector<1x1xf32>
    %53 = vector.broadcast %52 : vector<1x1xf32> to vector<1x128xf32>
    %54 = arith.subf %50, %53 : vector<1x128xf32>
    %55 = math.exp %54 : vector<1x128xf32>
    %cst_25 = arith.constant dense<0.000000e+00> : vector<1xf32>
    %56 = vector.multi_reduction <add>, %55, %cst_25 [1] : vector<1x128xf32> to vector<1xf32>
    %57 = vector.shape_cast %56 : vector<1xf32> to vector<1x1xf32>
    %58 = math.log %57 : vector<1x1xf32>
    %59 = arith.addf %58, %52 : vector<1x1xf32>
    %60 = arith.subf %59, %44 : vector<1x1xf32>
    %c0_26 = arith.constant 0 : index
    %c0_27 = arith.constant 0 : index
    %c0_28 = arith.constant 0 : index
    %61 = vector.load %arg8[%c0_26, %c0_27, %c0_28] : memref<1x1x1xf32, #tpu.memory_space<vmem>>, vector<1x1x1xf32>
    %62 = vector.shape_cast %61 : vector<1x1x1xf32> to vector<1x1xf32>
    %63 = vector.shape_cast %60 : vector<1x1xf32> to vector<1x1x1xf32>
    tpu.vector_store %arg8[%c0_26, %c0_27, %c0_28], %63 {strides = array<i32>} : memref<1x1x1xf32, #tpu.memory_space<vmem>>, vector<1x1x1xf32>,
    return
  }
  func.func @transform_0(%arg0: i32) -> (i32, i32, i32) {
    %c0_i32 = arith.constant 0 : i32
    %c0_i32_0 = arith.constant 0 : i32
    %c0_i32_1 = arith.constant 0 : i32
    return %arg0, %c0_i32, %c0_i32_0 : i32, i32, i32
  }
  func.func @transform_1(%arg0: i32) -> (i32, i32, i32) {
    %c0_i32 = arith.constant 0 : i32
    %c0_i32_0 = arith.constant 0 : i32
    %c0_i32_1 = arith.constant 0 : i32
    return %arg0, %c0_i32, %c0_i32_0 : i32, i32, i32
  }
  func.func @transform_2(%arg0: i32) -> (i32, i32, i32) {
    %c0_i32 = arith.constant 0 : i32
    %c0_i32_0 = arith.constant 0 : i32
    %c0_i32_1 = arith.constant 0 : i32
    return %arg0, %c0_i32, %c0_i32_0 : i32, i32, i32
  }
  func.func @transform_3(%arg0: i32) -> (i32, i32, i32) {
    %c0_i32 = arith.constant 0 : i32
    %c0_i32_0 = arith.constant 0 : i32
    %c0_i32_1 = arith.constant 0 : i32
    return %arg0, %c0_i32, %c0_i32_0 : i32, i32, i32
  }
  func.func @transform_4(%arg0: i32) -> (i32, i32) {
    %c0_i32 = arith.constant 0 : i32
    %c0_i32_0 = arith.constant 0 : i32
    %c0_i32_1 = arith.constant 0 : i32
    return %c0_i32, %c0_i32_0 : i32, i32
  }
  func.func @transform_5(%arg0: i32) -> (i32, i32) {
    %c0_i32 = arith.constant 0 : i32
    %c0_i32_0 = arith.constant 0 : i32
    %c0_i32_1 = arith.constant 0 : i32
    return %c0_i32, %c0_i32_0 : i32, i32
  }
  func.func @transform_6(%arg0: i32) -> (i32, i32) {
    %c0_i32 = arith.constant 0 : i32
    %c0_i32_0 = arith.constant 0 : i32
    %c0_i32_1 = arith.constant 0 : i32
    return %c0_i32, %c0_i32_0 : i32, i32
  }
  func.func @transform_7(%arg0: i32) -> (i32, i32, i32) {
    %c0_i32 = arith.constant 0 : i32
    %c0_i32_0 = arith.constant 0 : i32
    %c0_i32_1 = arith.constant 0 : i32
    return %arg0, %c0_i32, %c0_i32_0 : i32, i32, i32
  }
}

</mosaic_0001>

<bundles_post_ra>
// kernel: _lambda_.13
= control target key start
LH: loop header
LB: loop body
LE: loop exit
PB: predicated region body
PF: predicated region fallthrough
CT: control target
= control target key end

     0   :  { %vm16_vm0 = vcmask 261120   ;;  %vm70_vm1 = vcmask 257024   ;;  %s129_s0 = inlined_call_operand.vmem [shape: f32[16,32], index: 0, kind: input, shape index: {}]   ;;  %s130_s1 = inlined_call_operand.vmem [shape: f32[1,32], index: 1, kind: input, shape index: {}]   ;;  %s131_s2 = inlined_call_operand.vmem [shape: f32[1,32], index: 2, kind: input, shape index: {}]   ;;  %s132_s3 = inlined_call_operand.vmem [shape: bf16[16,32], index: 3, kind: output, shape index: {}]  }
   0x1   :  { %v14_v0 = vld [vmem:[%s129_s0] sm:$0xff]  ;;  %v15_v1 = vld [vmem:[%s129_s0 + $0x8] sm:$0xff] }
   0x2   :  { %v17_v2 = vsel %vm16_vm0, %v14_v0, 0.0  ;;  %v20_v3 = vsel %vm16_vm0, %v15_v1, 0.0  ;;  %v77_v21 = vld [vmem:[%s130_s1] ss:$0 sm:$0xff] }
   0x3   :  { %18 = vadd.xlane.f32.xlu0 %v17_v2  ;;  %v78_v23 = vld [vmem:[%s131_s2] ss:$0 sm:$0xff] }
   0x7   :  { %21 = vadd.xlane.f32.xlu0 %v20_v3 }
  0x90   :  { %v19_v4 = vpop.xlane.xlu0 %18 }
  0x91   :  { %v24_v5 = vmul.f32 0.03125, %v19_v4 }
  0x93   :  { %v26_v6 = vsub.f32 %v14_v0, %v24_v5 }
  0x94   :  { %v22_v7 = vpop.xlane.xlu0 %21 }
  0x95   :  { %v25_v8 = vmul.f32 0.03125, %v22_v7  ;;  %v28_v9 = vmul.f32 %v26_v6, %v26_v6 }
  0x97   :  { %v27_v10 = vsub.f32 %v15_v1, %v25_v8  ;;  %v30_v11 = vsel %vm16_vm0, %v28_v9, 0.0 }
  0x98   :  { %31 = vadd.xlane.f32.xlu1 %v30_v11 }
  0x99   :  { %v29_v12 = vmul.f32 %v27_v10, %v27_v10 }
  0x9b   :  { %v33_v13 = vsel %vm16_vm0, %v29_v12, 0.0 }
  0x9c   :  { %34 = vadd.xlane.f32.xlu1 %v33_v13 }
 0x125   :  { %v32_v14 = vpop.xlane.xlu1 %31 }
 0x126   :  { %v36_v15 = vmul.f32 0.03125, %v32_v14 }
 0x128   :  { %v38_v16 = vadd.f32 1e-12, %v36_v15 }
 0x129   :  { %v35_v17 = vpop.xlane.xlu1 %34 }
 0x12a   :  { %83 = vrsqrt.f32 %v38_v16  ;;  %v37_v18 = vmul.f32 0.03125, %v35_v17 }
 0x12c   :  { %v39_v19 = vadd.f32 1e-12, %v37_v18 }
 0x12e   :  { %85 = vrsqrt.f32 %v39_v19 }
 0x134   :  { %v84_v20 = vpop.eup %83 }
 0x135   :  { %v42_v22 = vmul.f32 %v84_v20, %v26_v6 }
 0x137   :  { %v51_v24 = vmul.f32 %v77_v21, %v42_v22 }
 0x138   :  { %v86_v25 = vpop.eup %85 }
 0x139   :  { %v60_v26 = vadd.f32 %v78_v23, %v51_v24  ;;  %v43_v27 = vmul.f32 %v86_v25, %v27_v10 }
 0x13b   :  { %v81_v28 = vpack.c.bf16 %v60_v26, %v60_v26  ;;  %v52_v29 = vmul.f32 %v77_v21, %v43_v27 }
 0x13d   :  { %71 = vst.msk [vmem:[%s132_s3] sm:$0xf] %vm70_vm1, %v81_v28  ;;  %v61_v30 = vadd.f32 %v78_v23, %v52_v29 }
 0x13f   :  { %v82_v31 = vpack.c.bf16 %v61_v30, %v61_v30 }
 0x141   :  { %72 = vst.msk [vmem:[%s132_s3 + $0x4] sm:$0xf] %vm70_vm1, %v82_v31 }

// kernel: _lambda_.14
= control target key start
LH: loop header
LB: loop body
LE: loop exit
PB: predicated region body
PF: predicated region fallthrough
CT: control target
= control target key end

     0   :  { %v130_v0 = vmov 0.0   ;;  %vm131_vm0 = vmmov 0   ;;  %vm45_vm1 = vcmask 261120   ;;  %vm98_vm2 = vcmask 781312   ;;  %s170_s1 = inlined_call_operand.vmem [shape: bf16[32,96], index: 1, kind: input, shape index: {}]   ;;  %s171_s0 = inlined_call_operand.vmem [shape: bf16[16,32], index: 0, kind: input, shape index: {}]   ;;  %s172_s2 = inlined_call_operand.vmem [shape: f32[1,96], index: 2, kind: input, shape index: {}]   ;;  %s173_s3 = inlined_call_operand.vmem [shape: bf16[16,96], index: 3, kind: output, shape index: {}]  }
   0x1   :  { %117 = vmatprep.subr.bf16.mxu0 %v130_v0  ;;  %v127_v1 = vld [vmem:[%s170_s1] sm:$0xff]   ;;  %121 = vmatprep.mubr.msk.bf16.mxu0 %vm131_vm0, %v130_v0  ;;  %v128_v2 = vld [vmem:[%s170_s1 + $0x8] sm:$0xff]  }
   0x2   :  { %118 = vmatpush3.bf16.msra.mxu0 %v127_v1  ;;  %v129_v3 = vld [vmem:[%s171_s0] sm:$0xff]  }
   0x3   :  { %119 = vmatprep.subr.bf16.mxu0 %v130_v0  ;;  %v105_v4 = vld [vmem:[%s172_s2] ss:$0 sm:$0xff] }
   0x6   :  { %120 = vmatpush3.bf16.msra.mxu0 %v128_v2 }
   0x9   :  { %122 = vmatmul.mubr.msk.bf16.vlgmr.msra.gmra.mrb[0].mxu0 %vm45_vm1, %v129_v3 }
  0xdc   :  { %v83_v5 = vpop.f32.mrb[0].mxu0 }
  0xdd   :  { %v84_v6 = vadd.f32 %v105_v4, %v83_v5  ;;  %v123_v7 = vpop.f32.mrb[1].mxu0 }
  0xde   :  { %v86_v8 = vpop.f32.mrb[2].mxu0 }
  0xdf   :  { %v112_v9 = vpack.c.bf16 %v84_v6, %v84_v6  ;;  %v87_v10 = vadd.f32 %v105_v4, %v86_v8  ;;  %v124_v11 = vpop.f32.mrb[3].mxu0 }
  0xe1   :  { %99 = vst.msk [vmem:[%s173_s3] sm:$0xf] %vm98_vm2, %v112_v9  ;;  %v113_v12 = vpack.c.bf16 %v87_v10, %v87_v10 }
  0xe3   :  { %100 = vst.msk [vmem:[%s173_s3 + $0x4] sm:$0xf] %vm98_vm2, %v113_v12 }

// kernel: _lambda_.16
= control target key start
LH: loop header
LB: loop body
LE: loop exit
PB: predicated region body
PF: predicated region fallthrough
CT: control target
= control target key end

     0   :  { %v200_v0 = vmov 0.0   ;;  %vm201_vm0 = vmmov 0   ;;  %vm54_vm1 = vcmask 261120   ;;  %vm158_vm2 = vcmask 257024   ;;  %s269_s1 = inlined_call_operand.vmem [shape: bf16[32,32], index: 1, kind: input, shape index: {}]   ;;  %s270_s0 = inlined_call_operand.vmem [shape: bf16[16,32], index: 0, kind: input, shape index: {}]   ;;  %s271_s3 = inlined_call_operand.vmem [shape: bf16[16,32], index: 3, kind: input, shape index: {}]   ;;  %s272_s2 = inlined_call_operand.vmem [shape: f32[1,32], index: 2, kind: input, shape index: {}]   ;;  %s273_s4 = inlined_call_operand.vmem [shape: f32[1,32], index: 4, kind: input, shape index: {}]   ;;  %s274_s5 = inlined_call_operand.vmem [shape: f32[1,32], index: 5, kind: input, shape index: {}]   ;;  %s275_s6 = inlined_call_operand.vmem [shape: bf16[16,32], index: 6, kind: output, shape index: {}]  }
   0x1   :  { %183 = vmatprep.subr.bf16.mxu0 %v200_v0  ;;  %v193_v1 = vld [vmem:[%s269_s1] sm:$0xff]   ;;  %187 = vmatprep.mubr.msk.bf16.mxu0 %vm201_vm0, %v200_v0  ;;  %v194_v2 = vld [vmem:[%s269_s1 + $0x8] sm:$0xff]  }
   0x2   :  { %184 = vmatpush3.bf16.msra.mxu0 %v193_v1  ;;  %v195_v3 = vld [vmem:[%s270_s0] sm:$0xff]  }
   0x3   :  { %185 = vmatprep.subr.bf16.mxu0 %v200_v0  ;;  %v177_v4 = vld [vmem:[%s271_s3] sm:$0xff]  }
   0x4   :  { %v165_v5 = vld [vmem:[%s272_s2] ss:$0 sm:$0xff]  ;;  %v178_v6 = vunpack.c.l.bf16 %v177_v4  ;;  %v179_v10 = vunpack.c.h.bf16 %v177_v4 }
   0x5   :  { %v170_v35 = vld [vmem:[%s273_s4] ss:$0 sm:$0xff] }
   0x6   :  { %186 = vmatpush3.bf16.msra.mxu0 %v194_v2  ;;  %v171_v37 = vld [vmem:[%s274_s5] ss:$0 sm:$0xff] }
   0x9   :  { %188 = vmatmul.mubr.msk.bf16.vlgmr.msra.gmra.mrb[0].mxu0 %vm54_vm1, %v195_v3 }
  0xdc   :  { %v92_v7 = vpop.f32.mrb[0].mxu0 }
  0xdd   :  { %v93_v8 = vadd.f32 %v165_v5, %v92_v7  ;;  %v189_v9 = vpop.f32.mrb[1].mxu0 }
  0xde   :  { %v95_v11 = vpop.f32.mrb[2].mxu0 }
  0xdf   :  { %v96_v12 = vadd.f32 %v165_v5, %v95_v11  ;;  %v190_v13 = vpop.f32.mrb[3].mxu0  ;;  %v103_v14 = vadd.f32 %v178_v6, %v93_v8 }
  0xe1   :  { %v105_v15 = vsel %vm54_vm1, %v103_v14, 0.0  ;;  %v104_v16 = vadd.f32 %v179_v10, %v96_v12 }
  0xe2   :  { %106 = vadd.xlane.f32.xlu0 %v105_v15 }
  0xe3   :  { %v108_v17 = vsel %vm54_vm1, %v104_v16, 0.0 }
  0xe6   :  { %109 = vadd.xlane.f32.xlu0 %v108_v17 }
 0x16f   :  { %v107_v18 = vpop.xlane.xlu0 %106 }
 0x170   :  { %v112_v19 = vmul.f32 0.03125, %v107_v18 }
 0x172   :  { %v114_v20 = vsub.f32 %v103_v14, %v112_v19 }
 0x173   :  { %v110_v21 = vpop.xlane.xlu0 %109 }
 0x174   :  { %v113_v22 = vmul.f32 0.03125, %v110_v21  ;;  %v116_v23 = vmul.f32 %v114_v20, %v114_v20 }
 0x176   :  { %v115_v24 = vsub.f32 %v104_v16, %v113_v22  ;;  %v118_v25 = vsel %vm54_vm1, %v116_v23, 0.0 }
 0x177   :  { %119 = vadd.xlane.f32.xlu1 %v118_v25 }
 0x178   :  { %v117_v26 = vmul.f32 %v115_v24, %v115_v24 }
 0x17a   :  { %v121_v27 = vsel %vm54_vm1, %v117_v26, 0.0 }
 0x17b   :  { %122 = vadd.xlane.f32.xlu1 %v121_v27 }
 0x204   :  { %v120_v28 = vpop.xlane.xlu1 %119 }
 0x205   :  { %v124_v29 = vmul.f32 0.03125, %v120_v28 }
 0x207   :  { %v126_v30 = vadd.f32 1e-12, %v124_v29 }
 0x208   :  { %v123_v31 = vpop.xlane.xlu1 %122 }
 0x209   :  { %196 = vrsqrt.f32 %v126_v30  ;;  %v125_v32 = vmul.f32 0.03125, %v123_v31 }
 0x20b   :  { %v127_v33 = vadd.f32 1e-12, %v125_v32 }
 0x20d   :  { %198 = vrsqrt.f32 %v127_v33 }
 0x213   :  { %v197_v34 = vpop.eup %196 }
 0x214   :  { %v130_v36 = vmul.f32 %v197_v34, %v114_v20 }
 0x216   :  { %v139_v38 = vmul.f32 %v170_v35, %v130_v36 }
 0x217   :  { %v199_v39 = vpop.eup %198 }
 0x218   :  { %v148_v40 = vadd.f32 %v171_v37, %v139_v38  ;;  %v131_v41 = vmul.f32 %v199_v39, %v115_v24 }
 0x21a   :  { %v174_v42 = vpack.c.bf16 %v148_v40, %v148_v40  ;;  %v140_v43 = vmul.f32 %v170_v35, %v131_v41 }
 0x21c   :  { %159 = vst.msk [vmem:[%s275_s6] sm:$0xf] %vm158_vm2, %v174_v42  ;;  %v149_v44 = vadd.f32 %v171_v37, %v140_v43 }
 0x21e   :  { %v175_v45 = vpack.c.bf16 %v149_v44, %v149_v44 }
 0x220   :  { %160 = vst.msk [vmem:[%s275_s6 + $0x4] sm:$0xf] %vm158_vm2, %v175_v45 }

// kernel: _lambda_.15
= control target key start
LH: loop header
LB: loop body
LE: loop exit
PB: predicated region body
PF: predicated region fallthrough
CT: control target
= control target key end

     0   :  { %s563_s9 = smov 0   ;;  %s615_s0 = inlined_call_operand.vmem [shape: bf16[2,8,96], index: 0, kind: input, shape index: {}]   ;;  %s616_s1 = inlined_call_operand.vmem [shape: f32[2,1,8], index: 1, kind: input, shape index: {}]   ;;  %s617_s2 = inlined_call_operand.vmem [shape: bf16[2,8,32], index: 2, kind: output, shape index: {}]  }
   0x1 LB: > { %s460_s10 = sadd.s32 4294967295, %s538_s9   ;;  %p464_p0 = scmp.ge.s32.totalorder %s538_s9, 1  ;;  %s538_s9 = sphi %s563_s9, %s12_s9  }
   0x2   : > { %p119_p1 = scmp.lt.s32.totalorder %s538_s9, 3 }
   0x4   : > { %p120_p2 = pnand %p464_p0, %p119_p1 }
   0x5   : > { %p142_p3 = scmp.lt.s32.totalorder (!%p120_p2), %s460_s10, 1  ;;  %v540_v0 = vmov (!%p120_p2), 0.0   ;;  %vm541_vm0 = vmmov (!%p120_p2), 0   ;;  %s542_s15 = smov (!%p120_p2), 96   ;;  %vm161_vm1 = vcmask (!%p120_p2), 130048   ;;  %vm216_vm2 = vcmask (!%p120_p2), 64512  }
   0x6   : > { %123 = sbr.rel (%p120_p2) target bundleno = 1545 (0x609), region = 28  ;;  %483 = vmatprep.subr.bf16.mxu0 (!%p120_p2), %v540_v0  ;;  %485 = vmatprep.mubr.msk.bf16.mxu0 (!%p120_p2), %vm541_vm0, %v540_v0  ;;  %s543_s16 = smov (!%p120_p2), 64   ;;  %vm234_vm3 = vcmask (!%p120_p2), 1043456   ;;  %vm396_vm4 = vcmask (!%p120_p2), 257024  }
   0x7   : > { %489 = vmatprep.subr.bf16.mxu1 (!%p120_p2), %v540_v0  ;;  %491 = vmatprep.mubr.msk.bf16.mxu1 (!%p120_p2), %vm541_vm0, %v540_v0  ;;  %s544_s20 = smov (!%p120_p2), 80   ;;  %s545_s21 = smov (!%p120_p2), 112  }
   0x8   : > { %s546_s22 = smov (!%p120_p2), 48   ;;  %s547_s23 = smov (!%p120_p2), 16  }
   0xd   : > { %s619_s10 = smov (!%p142_p3, %s460_s10), 1 }
   0xe   : > { %s465_s11 = sshll.u32 %s619_s10, 2  ;;  %s148_s19 = scalar_lea.vmem %s616_s1, %s619_s10 }
   0xf   : > { %s145_s14 = scalar_lea.vmem %s615_s0, %s465_s11  ;;  %v469_v6 = vld [vmem:[%s148_s19] ss:$0 sm:$0xff]  ;;  %s152_s26 = scalar_lea.vmem %s617_s2, %s465_s11 }
  0x10   : > { %v154_v1 = vld [vmem:[%s145_s14] sm:$0xf] }
  0x11   : > { %v581_v2 = vcombine.low %v154_v1, %v154_v1 }
  0x13   : > { %159 = vrot.lane.b32.xlu0 %v581_v2, %s542_s15  ;;  %229 = vrot.lane.b32.xlu1 %v581_v2, %s543_s16 }
  0x85   : > { %v160_v3 = vpop.permute.xlu0 %159  ;;  %v230_v13 = vpop.permute.xlu1 %229 }
  0x86   : > { %v166_v4 = vsel %vm161_vm1, %v160_v3, 0  ;;  %v236_v14 = vsel %vm234_vm3, %v230_v13, 0 }
  0x87   : > { %484 = vmatpush3.bf16.xpose.msra.mxu0 %v166_v4  ;;  %490 = vmatpush3.bf16.msra.mxu1 %v236_v14 }
  0x88   : > { %501 = vmatprep.subr.bf16.mxu0 %v540_v0  ;;  %495 = vmatprep.subr.bf16.mxu1 %v540_v0 }
  0x8e   : > { %486 = vmatmul.mubr.msk.bf16.vlgmr.msra.gmra.mrb[0].mxu0 %vm161_vm1, %v154_v1 }
  0x8f   : > { %503 = vmatprep.mubr.msk.bf16.mxu0 %vm541_vm0, %v540_v0 }
 0x161   : > { %v202_v5 = vpop.f32.mrb[0].mxu0 }
 0x162   : > { %v208_v7 = vmul.f32 0.25, %v202_v5  ;;  %v487_v8 = vpop.f32.mrb[1].mxu0 }
 0x163   : > { %v205_v9 = vpop.f32.mrb[2].mxu0 }
 0x164   : > { %v488_v10 = vpop.f32.mrb[3].mxu0  ;;  %v215_v11 = vadd.f32 %v469_v6, %v208_v7 }
 0x166   : > { %v217_v12 = vsel %vm216_vm2, %v215_v11, -inf }
 0x167   : > { %218 = vmax.xlane.f32.xlu0 %v217_v12 }
 0x1f4   : > { %v219_v15 = vpop.xlane.xlu0 %218 }
 0x1f5   : > { %v220_v16 = vsub.f32 %v215_v11, %v219_v15 }
 0x1f7   : > { %v221_v17 = vmul.f32 1.442695, %v220_v16 }
 0x1f9   : > { %524 = vpow2.f32 %v221_v17 }
 0x203   : > { %v525_v18 = vpop.eup %524 }
 0x204   : > { %v223_v19 = vsel %vm216_vm2, %v525_v18, 0.0 }
 0x205   : > { %224 = vadd.xlane.f32.xlu1 %v223_v19 }
 0x216   : > { %280 = vrot.lane.b32.xlu1 %v581_v2, %s544_s20 }
 0x21a   : > { %278 = vrot.lane.b32.xlu1 %v581_v2, %s545_s21 }
 0x292   : > { %v225_v20 = vpop.xlane.xlu1 %224 }
 0x293   : > { %526 = vrcp.f32 %v225_v20 }
 0x296   : > { %v281_v22 = vpop.permute.xlu1 %280 }
 0x297   : > { %v286_v24 = vsel %vm161_vm1, %v281_v22, 0 }
 0x29a   : > { %v279_v26 = vpop.permute.xlu1 %278 }
 0x29d   : > { %v527_v21 = vpop.eup %526 }
 0x29e   : > { %v227_v23 = vmul.f32 %v527_v21, %v525_v18 }
 0x2a0   : > { %v228_v25 = vpack.c.bf16 %v227_v23, %v227_v23 }
 0x2a2   : > { %492 = vmatmul.mubr.msk.bf16.vlgmr.msra.gmra.mrb[0].mxu1 %vm216_vm2, %v228_v25 }
 0x2a3   : > { %496 = vmatpush3.bf16.xpose.msra.mxu1 %v286_v24  ;;  %497 = vmatprep.mubr.msk.bf16.mxu1 %vm541_vm0, %v540_v0 }
 0x2aa   : > { %498 = vmatmul.mubr.msk.bf16.vlgmr.msra.gmra.mrb[4].mxu1 %vm161_vm1, %v279_v26 }
 0x375   : > { %v272_v27 = vpop.f32.mrb[0].mxu1 }
 0x376   : > { %v493_v28 = vpop.f32.mrb[1].mxu1 }
 0x377   : > { %v275_v29 = vpop.f32.mrb[2].mxu1 }
 0x378   : > { %v494_v30 = vpop.f32.mrb[3].mxu1 }
 0x37d   : > { %v322_v31 = vpop.f32.mrb[4].mxu1 }
 0x37e   : > { %v328_v32 = vmul.f32 0.25, %v322_v31  ;;  %v499_v33 = vpop.f32.mrb[5].mxu1 }
 0x37f   : > { %v325_v34 = vpop.f32.mrb[6].mxu1 }
 0x380   : > { %v500_v35 = vpop.f32.mrb[7].mxu1  ;;  %v329_v36 = vadd.f32 %v469_v6, %v328_v32 }
 0x382   : > { %v330_v37 = vsel %vm216_vm2, %v329_v36, -inf }
 0x383   : > { %331 = vmax.xlane.f32.xlu1 %v330_v37 }
 0x410   : > { %v332_v38 = vpop.xlane.xlu1 %331 }
 0x411   : > { %v333_v39 = vsub.f32 %v329_v36, %v332_v38 }
 0x413   : > { %v334_v40 = vmul.f32 1.442695, %v333_v39 }
 0x415   : > { %528 = vpow2.f32 %v334_v40 }
 0x41f   : > { %v529_v41 = vpop.eup %528 }
 0x420   : > { %v336_v42 = vsel %vm216_vm2, %v529_v41, 0.0 }
 0x421   : > { %337 = vadd.xlane.f32.xlu0 %v336_v42 }
 0x437   : > { %342 = vrot.lane.b32.xlu0 %v581_v2, %s546_s22 }
 0x4ae   : > { %v338_v43 = vpop.xlane.xlu0 %337 }
 0x4af   : > { %530 = vrcp.f32 %v338_v43 }
 0x4b2   : > { %v343_v44 = vpop.permute.xlu0 %342 }
 0x4b3   : > { %v348_v45 = vsel %vm234_vm3, %v343_v44, 0 }
 0x4b4   : > { %502 = vmatpush3.bf16.msra.mxu0 %v348_v45 }
 0x4b9   : > { %v531_v46 = vpop.eup %530 }
 0x4ba   : > { %v340_v47 = vmul.f32 %v531_v46, %v529_v41 }
 0x4bc   : > { %v341_v48 = vpack.c.bf16 %v340_v47, %v340_v47 }
 0x4be   : > { %504 = vmatmul.mubr.msk.bf16.vlgmr.msra.gmra.mrb[4].mxu0 %vm216_vm2, %v341_v48 }
 0x591   : > { %v384_v49 = vpop.f32.mrb[4].mxu0 }
 0x592   : > { %391 = vrot.lane.b32.xlu0 %v384_v49, %s547_s23  ;;  %v505_v50 = vpop.f32.mrb[5].mxu0 }
 0x593   : > { %v387_v51 = vpop.f32.mrb[6].mxu0 }
 0x594   : > { %v506_v52 = vpop.f32.mrb[7].mxu0 }
 0x604   : > { %v392_v53 = vpop.permute.xlu0 %391 }
 0x605   : > { %v394_v54 = vsel %vm161_vm1, %v272_v27, %v392_v53 }
 0x606   : > { %v395_v55 = vpack.c.bf16 %v394_v54, %v394_v54 }
 0x608   : > { %397 = vst.msk [vmem:[%s152_s26] sm:$0xf] %vm396_vm4, %v395_v55 }
 0x609 PF: > { %s12_s9 = sadd.s32 1, %s538_s9  }
 0x60a   : > { %p9_p4 = scmp.ge.s32.totalorder %s12_s9, 4  }
 0x60c   :  { %11 = sbr.rel (!%p9_p4) target bundleno = 1 (0x1), region = 61 }

// kernel: _lambda_.17
= control target key start
LH: loop header
LB: loop body
LE: loop exit
PB: predicated region body
PF: predicated region fallthrough
CT: control target
= control target key end

     0   :  { %v152_v0 = vmov 0.0   ;;  %vm153_vm0 = vmmov 0   ;;  %vm45_vm1 = vcmask 261120   ;;  %vm116_vm2 = vcmask 519168   ;;  %s192_s1 = inlined_call_operand.vmem [shape: bf16[32,64], index: 1, kind: input, shape index: {}]   ;;  %s193_s0 = inlined_call_operand.vmem [shape: bf16[16,32], index: 0, kind: input, shape index: {}]   ;;  %s194_s2 = inlined_call_operand.vmem [shape: f32[1,64], index: 2, kind: input, shape index: {}]   ;;  %s195_s3 = inlined_call_operand.vmem [shape: bf16[16,64], index: 3, kind: output, shape index: {}]  }
   0x1   :  { %135 = vmatprep.subr.bf16.mxu0 %v152_v0  ;;  %v145_v1 = vld [vmem:[%s192_s1] sm:$0xff]   ;;  %139 = vmatprep.mubr.msk.bf16.mxu0 %vm153_vm0, %v152_v0  ;;  %v146_v2 = vld [vmem:[%s192_s1 + $0x8] sm:$0xff]  }
   0x2   :  { %136 = vmatpush3.bf16.msra.mxu0 %v145_v1  ;;  %v147_v3 = vld [vmem:[%s193_s0] sm:$0xff]  }
   0x3   :  { %137 = vmatprep.subr.bf16.mxu0 %v152_v0  ;;  %v123_v4 = vld [vmem:[%s194_s2] ss:$0 sm:$0xff] }
   0x6   :  { %138 = vmatpush3.bf16.msra.mxu0 %v146_v2 }
   0x9   :  { %140 = vmatmul.mubr.msk.bf16.vlgmr.msra.gmra.mrb[0].mxu0 %vm45_vm1, %v147_v3 }
  0xdc   :  { %v83_v5 = vpop.f32.mrb[0].mxu0 }
  0xdd   :  { %v84_v6 = vadd.f32 %v123_v4, %v83_v5  ;;  %v141_v7 = vpop.f32.mrb[1].mxu0 }
  0xde   :  { %v86_v8 = vpop.f32.mrb[2].mxu0 }
  0xdf   :  { %v90_v9 = vmul.f32 %v84_v6, %v84_v6  ;;  %v87_v10 = vadd.f32 %v123_v4, %v86_v8  ;;  %v142_v11 = vpop.f32.mrb[3].mxu0 }
  0xe1   :  { %v92_v12 = vmul.f32 %v90_v9, %v84_v6  ;;  %v91_v13 = vmul.f32 %v87_v10, %v87_v10 }
  0xe3   :  { %v94_v14 = vmul.f32 0.044715, %v92_v12  ;;  %v93_v15 = vmul.f32 %v91_v13, %v87_v10 }
  0xe5   :  { %v96_v16 = vadd.f32 %v94_v14, %v84_v6  ;;  %v95_v17 = vmul.f32 0.044715, %v93_v15 }
  0xe7   :  { %v98_v18 = vmul.f32 0.7978846, %v96_v16  ;;  %v97_v19 = vadd.f32 %v95_v17, %v87_v10 }
  0xe9   :  { %148 = vtanh.f32 %v98_v18  ;;  %v99_v20 = vmul.f32 0.7978846, %v97_v19 }
  0xeb   :  { %150 = vtanh.f32 %v99_v20 }
  0xf3   :  { %v149_v21 = vpop.eup %148 }
  0xf4   :  { %v102_v22 = vadd.f32 1.0, %v149_v21 }
  0xf5   :  { %v151_v23 = vpop.eup %150 }
  0xf6   :  { %v104_v24 = vmul.f32 0.5, %v102_v22  ;;  %v103_v25 = vadd.f32 1.0, %v151_v23 }
  0xf8   :  { %v106_v26 = vmul.f32 %v104_v24, %v84_v6  ;;  %v105_v27 = vmul.f32 0.5, %v103_v25 }
  0xfa   :  { %v130_v28 = vpack.c.bf16 %v106_v26, %v106_v26  ;;  %v107_v29 = vmul.f32 %v105_v27, %v87_v10 }
  0xfc   :  { %117 = vst.msk [vmem:[%s195_s3] sm:$0xf] %vm116_vm2, %v130_v28  ;;  %v131_v30 = vpack.c.bf16 %v107_v29, %v107_v29 }
  0xfe   :  { %118 = vst.msk [vmem:[%s195_s3 + $0x4] sm:$0xf] %vm116_vm2, %v131_v30 }

// kernel: _lambda_.24
= control target key start
LH: loop header
LB: loop body
LE: loop exit
PB: predicated region body
PF: predicated region fallthrough
CT: control target
= control target key end

     0   :  { %v117_v0 = vmov 0.0   ;;  %vm118_vm0 = vmmov 0   ;;  %vm45_vm1 = vcmask 261120   ;;  %s157_s1 = inlined_call_operand.vmem [shape: bf16[32,128], index: 1, kind: input, shape index: {}]   ;;  %s158_s0 = inlined_call_operand.vmem [shape: bf16[16,32], index: 0, kind: input, shape index: {}]   ;;  %s159_s2 = inlined_call_operand.vmem [shape: f32[1,128], index: 2, kind: input, shape index: {}]   ;;  %s160_s3 = inlined_call_operand.vmem [shape: f32[16,128], index: 3, kind: output, shape index: {}]  }
   0x1   :  { %104 = vmatprep.subr.bf16.mxu0 %v117_v0  ;;  %v114_v1 = vld [vmem:[%s157_s1] sm:$0xff]   ;;  %108 = vmatprep.mubr.msk.bf16.mxu0 %vm118_vm0, %v117_v0  ;;  %v115_v2 = vld [vmem:[%s157_s1 + $0x8] sm:$0xff]  }
   0x2   :  { %105 = vmatpush3.bf16.msra.mxu0 %v114_v1  ;;  %v116_v3 = vld [vmem:[%s158_s0] sm:$0xff]  }
   0x3   :  { %106 = vmatprep.subr.bf16.mxu0 %v117_v0  ;;  %v96_v4 = vld [vmem:[%s159_s2] ss:$0 sm:$0xff] }
   0x6   :  { %107 = vmatpush3.bf16.msra.mxu0 %v115_v2 }
   0x9   :  { %109 = vmatmul.mubr.msk.bf16.vlgmr.msra.gmra.mrb[0].mxu0 %vm45_vm1, %v116_v3 }
  0xdc   :  { %v83_v5 = vpop.f32.mrb[0].mxu0 }
  0xdd   :  { %v84_v6 = vadd.f32 %v96_v4, %v83_v5  ;;  %v110_v7 = vpop.f32.mrb[1].mxu0 }
  0xde   :  { %v86_v8 = vpop.f32.mrb[2].mxu0 }
  0xdf   :  { %90 = vst [vmem:[%s160_s3] sm:$0xff] %v84_v6  ;;  %v87_v9 = vadd.f32 %v96_v4, %v86_v8  ;;  %v111_v10 = vpop.f32.mrb[3].mxu0 }
  0xe1   :  { %91 = vst [vmem:[%s160_s3 + $0x8] sm:$0xff] %v87_v9 }

// kernel: _lambda_.18
= control target key start
LH: loop header
LB: loop body
LE: loop exit
PB: predicated region body
PF: predicated region fallthrough
CT: control target
= control target key end

     0   :  { %v227_v0 = vmov 0.0   ;;  %vm228_vm0 = vmmov 0   ;;  %vm70_vm1 = vcmask 523264   ;;  %vm121_vm2 = vcmask 261120   ;;  %s301_s1 = inlined_call_operand.vmem [shape: bf16[64,32], index: 1, kind: input, shape index: {}]   ;;  %s302_s0 = inlined_call_operand.vmem [shape: bf16[16,64], index: 0, kind: input, shape index: {}]   ;;  %s303_s3 = inlined_call_operand.vmem [shape: bf16[16,32], index: 3, kind: input, shape index: {}]   ;;  %s304_s2 = inlined_call_operand.vmem [shape: f32[1,32], index: 2, kind: input, shape index: {}]   ;;  %s305_s4 = inlined_call_operand.vmem [shape: f32[1,32], index: 4, kind: input, shape index: {}]   ;;  %s306_s5 = inlined_call_operand.vmem [shape: f32[1,32], index: 5, kind: input, shape index: {}]   ;;  %s307_s6 = inlined_call_operand.vmem [shape: bf16[16,32], index: 6, kind: output, shape index: {}]  }
   0x1   :  { %204 = vmatprep.subr.bf16.mxu0 %v227_v0  ;;  %v218_v1 = vld [vmem:[%s301_s1] sm:$0xff]   ;;  %212 = vmatprep.mubr.msk.bf16.mxu0 %vm228_vm0, %v227_v0  ;;  %v219_v2 = vld [vmem:[%s301_s1 + $0x8] sm:$0xff]   ;;  %v220_v3 = vld [vmem:[%s301_s1 + $0x10] sm:$0xff]   ;;  %vm175_vm3 = vcmask 257024  }
   0x2   :  { %205 = vmatpush3.bf16.msra.mxu0 %v218_v1  ;;  %v221_v4 = vld [vmem:[%s301_s1 + $0x18] sm:$0xff]   ;;  %v222_v5 = vld [vmem:[%s302_s0] sm:$0xff]  }
   0x3   :  { %206 = vmatprep.subr.bf16.mxu0 %v227_v0  ;;  %v196_v6 = vld [vmem:[%s303_s3] sm:$0xff]  }
   0x4   :  { %v182_v7 = vld [vmem:[%s304_s2] ss:$0 sm:$0xff]  ;;  %v197_v8 = vunpack.c.l.bf16 %v196_v6  ;;  %v198_v12 = vunpack.c.h.bf16 %v196_v6 }
   0x5   :  { %v189_v37 = vld [vmem:[%s305_s4] ss:$0 sm:$0xff] }
   0x6   :  { %207 = vmatpush3.bf16.msra.mxu0 %v219_v2  ;;  %v190_v39 = vld [vmem:[%s306_s5] ss:$0 sm:$0xff] }
   0x7   :  { %208 = vmatprep.subr.bf16.mxu0 %v227_v0 }
   0xa   :  { %209 = vmatpush3.bf16.msra.mxu0 %v220_v3 }
   0xb   :  { %210 = vmatprep.subr.bf16.mxu0 %v227_v0 }
   0xe   :  { %211 = vmatpush3.bf16.msra.mxu0 %v221_v4 }
  0x11   :  { %213 = vmatmul.mubr.msk.bf16.vlgmr.msra.gmra.mrb[0].mxu0 %vm70_vm1, %v222_v5 }
  0xe4   :  { %v108_v9 = vpop.f32.mrb[0].mxu0 }
  0xe5   :  { %v109_v10 = vadd.f32 %v182_v7, %v108_v9  ;;  %v214_v11 = vpop.f32.mrb[1].mxu0 }
  0xe6   :  { %v111_v13 = vpop.f32.mrb[2].mxu0 }
  0xe7   :  { %v112_v14 = vadd.f32 %v182_v7, %v111_v13  ;;  %v215_v15 = vpop.f32.mrb[3].mxu0  ;;  %v119_v16 = vadd.f32 %v197_v8, %v109_v10 }
  0xe9   :  { %v122_v17 = vsel %vm121_vm2, %v119_v16, 0.0  ;;  %v120_v18 = vadd.f32 %v198_v12, %v112_v14 }
  0xea   :  { %123 = vadd.xlane.f32.xlu0 %v122_v17 }
  0xeb   :  { %v125_v19 = vsel %vm121_vm2, %v120_v18, 0.0 }
  0xee   :  { %126 = vadd.xlane.f32.xlu0 %v125_v19 }
 0x177   :  { %v124_v20 = vpop.xlane.xlu0 %123 }
 0x178   :  { %v129_v21 = vmul.f32 0.03125, %v124_v20 }
 0x17a   :  { %v131_v22 = vsub.f32 %v119_v16, %v129_v21 }
 0x17b   :  { %v127_v23 = vpop.xlane.xlu0 %126 }
 0x17c   :  { %v130_v24 = vmul.f32 0.03125, %v127_v23  ;;  %v133_v25 = vmul.f32 %v131_v22, %v131_v22 }
 0x17e   :  { %v132_v26 = vsub.f32 %v120_v18, %v130_v24  ;;  %v135_v27 = vsel %vm121_vm2, %v133_v25, 0.0 }
 0x17f   :  { %136 = vadd.xlane.f32.xlu1 %v135_v27 }
 0x180   :  { %v134_v28 = vmul.f32 %v132_v26, %v132_v26 }
 0x182   :  { %v138_v29 = vsel %vm121_vm2, %v134_v28, 0.0 }
 0x183   :  { %139 = vadd.xlane.f32.xlu1 %v138_v29 }
 0x20c   :  { %v137_v30 = vpop.xlane.xlu1 %136 }
 0x20d   :  { %v141_v31 = vmul.f32 0.03125, %v137_v30 }
 0x20f   :  { %v143_v32 = vadd.f32 1e-12, %v141_v31 }
 0x210   :  { %v140_v33 = vpop.xlane.xlu1 %139 }
 0x211   :  { %223 = vrsqrt.f32 %v143_v32  ;;  %v142_v34 = vmul.f32 0.03125, %v140_v33 }
 0x213   :  { %v144_v35 = vadd.f32 1e-12, %v142_v34 }
 0x215   :  { %225 = vrsqrt.f32 %v144_v35 }
 0x21b   :  { %v224_v36 = vpop.eup %223 }
 0x21c   :  { %v147_v38 = vmul.f32 %v224_v36, %v131_v22 }
 0x21e   :  { %v156_v40 = vmul.f32 %v189_v37, %v147_v38 }
 0x21f   :  { %v226_v41 = vpop.eup %225 }
 0x220   :  { %v165_v42 = vadd.f32 %v190_v39, %v156_v40  ;;  %v148_v43 = vmul.f32 %v226_v41, %v132_v26 }
 0x222   :  { %v193_v44 = vpack.c.bf16 %v165_v42, %v165_v42  ;;  %v157_v45 = vmul.f32 %v189_v37, %v148_v43 }
 0x224   :  { %176 = vst.msk [vmem:[%s307_s6] sm:$0xf] %vm175_vm3, %v193_v44  ;;  %v166_v46 = vadd.f32 %v190_v39, %v157_v45 }
 0x226   :  { %v194_v47 = vpack.c.bf16 %v166_v46, %v166_v46 }
 0x228   :  { %177 = vst.msk [vmem:[%s307_s6 + $0x4] sm:$0xf] %vm175_vm3, %v194_v47 }

// kernel: _lambda_.25
= control target key start
LH: loop header
LB: loop body
LE: loop exit
PB: predicated region body
PF: predicated region fallthrough
CT: control target
= control target key end

     0   :  { %s1029_s24 = smov 0   ;;  %s1219_s0 = inlined_call_operand.vmem [shape: f32[2,8,128], index: 0, kind: input, shape index: {}]   ;;  %s1220_s1 = inlined_call_operand.vmem [shape: f32[2,8,128], index: 1, kind: input, shape index: {}]   ;;  %s1221_s2 = inlined_call_operand.vmem [shape: f32[2,8,1], index: 2, kind: input, shape index: {}]   ;;  %s1222_s3 = inlined_call_operand.vmem [shape: f32[2,8,1], index: 3, kind: input, shape index: {}]   ;;  %s1223_s4 = inlined_call_operand.vmem [shape: f32[1,128], index: 4, kind: input, shape index: {}]   ;;  %s1224_s5 = inlined_call_operand.vmem [shape: f32[1,128], index: 5, kind: input, shape index: {}]   ;;  %s1225_s6 = inlined_call_operand.vmem [shape: f32[128,128], index: 6, kind: input, shape index: {}]   ;;  %s1226_s7 = inlined_call_operand.vmem [shape: f32[2,1,1], index: 7, kind: output, shape index: {}]  }
   0x1 LB: > { %s716_s25 = sadd.s32 4294967295, %s971_s24   ;;  %p720_p0 = scmp.ge.s32.totalorder %s971_s24, 1  ;;  %s971_s24 = sphi %s1029_s24, %s17_s24  }
   0x2   : > { %p263_p1 = scmp.lt.s32.totalorder %s971_s24, 3 }
   0x4   : > { %p264_p2 = pnand %p720_p0, %p263_p1 }
   0x5   : > { %v329_v0 = vld [vmem:[%s1225_s6] sm:$0xff] (!%p264_p2)  ;;  %v330_v1 = vld [vmem:[%s1225_s6 + $0x8] sm:$0xff] (!%p264_p2)  ;;  %v331_v2 = vld [vmem:[%s1225_s6 + $0x10] sm:$0xff] (!%p264_p2)  ;;  %v981_v3 = vmov (!%p264_p2), 0.0|0.0   ;;  %vm982_vm0 = vmmov (!%p264_p2), 0   ;;  %v983_v8 = vmov (!%p264_p2), 0.0  }
   0x6   : > { %267 = sbr.rel (%p264_p2) target bundleno = 1175 (0x497), region = 48  ;;  %831 = vmatprep.subr.bf16.mxu0 (!%p264_p2), %v981_v3  ;;  %v832_v4 = vpack.c.bf16 (!%p264_p2), %v330_v1, %v329_v0  ;;  %v475_v5 = vmul.f32 (!%p264_p2), 1.442695, %v329_v0  ;;  %v477_v6 = vmul.f32 (!%p264_p2), 1.442695, %v330_v1  ;;  %v332_v7 = vld [vmem:[%s1225_s6 + $0x18] sm:$0xff] (!%p264_p2)  ;;  %793 = vmatprep.mubr.msk.f32.mxu0 (!%p264_p2), %vm982_vm0, %v983_v8 }
   0x7   : > { %v479_v9 = vmul.f32 (!%p264_p2), 1.442695, %v331_v2  ;;  %v481_v10 = vmul.f32 (!%p264_p2), 1.442695, %v332_v7  ;;  %v333_v11 = vld [vmem:[%s1225_s6 + $0x20] sm:$0xff] (!%p264_p2)  ;;  %v835_v12 = vpack.c.bf16 (!%p264_p2), %v332_v7, %v331_v2  ;;  %v334_v13 = vld [vmem:[%s1225_s6 + $0x28] sm:$0xff] (!%p264_p2) }
   0x8   : > { %833 = vmatpush3.bf16.msra.mxu0 (!%p264_p2), %v832_v4  ;;  %916 = vpow2.f32 (!%p264_p2), %v475_v5  ;;  %v483_v14 = vmul.f32 (!%p264_p2), 1.442695, %v333_v11  ;;  %v485_v15 = vmul.f32 (!%p264_p2), 1.442695, %v334_v13  ;;  %v335_v16 = vld [vmem:[%s1225_s6 + $0x30] sm:$0xff] (!%p264_p2)  ;;  %v336_v17 = vld [vmem:[%s1225_s6 + $0x38] sm:$0xff] (!%p264_p2)  ;;  %v838_v21 = vpack.c.bf16 (!%p264_p2), %v334_v13, %v333_v11 }
   0x9   : > { %918 = vpow2.f32 (!%p264_p2), %v477_v6  ;;  %834 = vmatprep.subr.bf16.mxu0 (!%p264_p2), %v981_v3  ;;  %v487_v18 = vmul.f32 (!%p264_p2), 1.442695, %v335_v16  ;;  %v489_v19 = vmul.f32 (!%p264_p2), 1.442695, %v336_v17  ;;  %v337_v20 = vld [vmem:[%s1225_s6 + $0x40] sm:$0xff] (!%p264_p2)  ;;  %v338_v22 = vld [vmem:[%s1225_s6 + $0x48] sm:$0xff] (!%p264_p2)  ;;  %v841_v31 = vpack.c.bf16 (!%p264_p2), %v336_v17, %v335_v16 }
   0xa   : > { %920 = vpow2.f32 (!%p264_p2), %v479_v9  ;;  %v491_v23 = vmul.f32 (!%p264_p2), 1.442695, %v337_v20  ;;  %p304_p3 = scmp.lt.s32.totalorder (!%p264_p2), %s716_s25, 1  ;;  %v493_v24 = vmul.f32 (!%p264_p2), 1.442695, %v338_v22  ;;  %v339_v25 = vld [vmem:[%s1225_s6 + $0x50] sm:$0xff] (!%p264_p2)  ;;  %v844_v43 = vpack.c.bf16 (!%p264_p2), %v338_v22, %v337_v20 }
   0xb   : > { %922 = vpow2.f32 (!%p264_p2), %v481_v10  ;;  %v340_v26 = vld [vmem:[%s1225_s6 + $0x58] sm:$0xff] (!%p264_p2)  ;;  %v495_v27 = vmul.f32 (!%p264_p2), 1.442695, %v339_v25  ;;  %v341_v29 = vld [vmem:[%s1225_s6 + $0x60] sm:$0xff] (!%p264_p2)  ;;  %v984_v30 = vmov (!%p264_p2), 0   ;;  %v342_v32 = vld [vmem:[%s1225_s6 + $0x68] sm:$0xff] (!%p264_p2) }
   0xc   : > { %836 = vmatpush3.bf16.msra.mxu0 (!%p264_p2), %v835_v12  ;;  %924 = vpow2.f32 (!%p264_p2), %v483_v14  ;;  %v497_v28 = vmul.f32 (!%p264_p2), 1.442695, %v340_v26  ;;  %915 = vset.pattern.permute.xlu0 (!%p264_p2), %v984_v30  ;;  %v499_v33 = vmul.f32 (!%p264_p2), 1.442695, %v341_v29  ;;  %v501_v34 = vmul.f32 (!%p264_p2), 1.442695, %v342_v32 }
   0xd   : > { %837 = vmatprep.subr.bf16.mxu0 %v981_v3  ;;  %926 = vpow2.f32 %v485_v15  ;;  %s1229_s25 = smov (!%p304_p3, %s716_s25), 1  ;;  %v343_v35 = vld [vmem:[%s1225_s6 + $0x70] sm:$0xff]  ;;  %v344_v37 = vld [vmem:[%s1225_s6 + $0x78] sm:$0xff]  ;;  %v847_v49 = vpack.c.bf16 %v340_v26, %v339_v25  ;;  %v850_v54 = vpack.c.bf16 %v342_v32, %v341_v29  ;;  %v327_v63 = vld [vmem:[%s1223_s4] sm:$0x1]  ;;  %vm346_vm1 = vcmask 1040384  }
   0xe   : > { %928 = vpow2.f32 %v487_v18  ;;  %s1089_s10 = sshll.u32 %s1229_s25, 3  ;;  %s322_s13 = scalar_lea.vmem %s1226_s7, %s1229_s25  ;;  %v503_v38 = vmul.f32 1.442695, %v343_v35  ;;  %v505_v41 = vmul.f32 1.442695, %v344_v37  ;;  %v853_v59 = vpack.c.bf16 %v344_v37, %v343_v35 }
   0xf   : > { %930 = vpow2.f32 %v489_v19  ;;  %s1103_s18 = scalar_lea.vmem %s1221_s2, %s1089_s10  ;;  %s319_s23 = scalar_lea.vmem %s1222_s3, %s1089_s10  ;;  %v1167_v17 = vld [vmem:[%s1224_s5] sm:$0x1]  ;;  %vm444_vm2 = vcmask 1046528  }
  0x10   : > { %839 = vmatpush3.bf16.msra.mxu0 %v838_v21  ;;  %932 = vpow2.f32 %v491_v23  ;;  %v325_v39 = vld [vmem:[%s1103_s18] sm:$0xff]  ;;  %s311_s28 = scalar_lea.vmem %s1220_s1, %s1089_s10  ;;  %s1157_s8 = scalar_lea.vmem %s1219_s0, %s1089_s10 }
  0x11   : > { %840 = vmatprep.subr.bf16.mxu0 %v981_v3  ;;  %934 = vpow2.f32 %v493_v24  ;;  %353 = vperm.xlu0 %915, %v325_v39   ;;  %v326_v44 = vld [vmem:[%s319_s23] sm:$0xff]  ;;  %s1175_s16 = smov 1  }
  0x12   : > { %v1105_v36 = vpop.eup %916  ;;  %936 = vpow2.f32 %v495_v27  ;;  %v324_v61 = vld [vmem:[%s311_s28] sm:$0xff] }
  0x13   : > { %v1115_v40 = vpop.eup %918  ;;  %938 = vpow2.f32 %v497_v28  ;;  %v323_v62 = vld [vmem:[%s1157_s8] sm:$0xff]  ;;  %v345_v0 = vmul.f32 %v327_v63, %v324_v61  ;;  %v438_v13 = vrot.slane %v324_v61, 1 }
  0x14   : > { %v1117_v42 = vpop.eup %920  ;;  %842 = vmatpush3.bf16.msra.mxu0 %v841_v31  ;;  %940 = vpow2.f32 %v499_v33  ;;  %v507_v1 = vadd.f32 %v327_v63, %v323_v62  }
  0x15   : > { %v1119_v45 = vpop.eup %922  ;;  %843 = vmatprep.subr.bf16.mxu0 %v981_v3  ;;  %942 = vpow2.f32 %v501_v34  ;;  %458 = vperm.xlu0 %915, %v326_v44   ;;  %v347_v2 = vsel %vm346_vm1, %v345_v0, 0.0 }
  0x16   : > { %v1122_v46 = vpop.eup %924  ;;  %944 = vpow2.f32 %v503_v38 }
  0x17   : > { %v1124_v47 = vpop.eup %926  ;;  %946 = vpow2.f32 %v505_v41 }
  0x18   : > { %v1126_v48 = vpop.eup %928  ;;  %845 = vmatpush3.bf16.msra.mxu0 %v844_v43 }
  0x19   : > { %v1128_v50 = vpop.eup %930  ;;  %846 = vmatprep.subr.bf16.mxu0 %v981_v3 }
  0x1a   : > { %v1131_v51 = vpop.eup %932 }
  0x1b   : > { %v1133_v52 = vpop.eup %934 }
  0x1c   : > { %v1135_v53 = vpop.eup %936  ;;  %848 = vmatpush3.bf16.msra.mxu0 %v847_v49 }
  0x1d   : > { %v1137_v55 = vpop.eup %938  ;;  %849 = vmatprep.subr.bf16.mxu0 %v981_v3 }
  0x1e   : > { %v1140_v56 = vpop.eup %940 }
  0x1f   : > { %v1142_v57 = vpop.eup %942 }
  0x20   : > { %v1144_v58 = vpop.eup %944  ;;  %851 = vmatpush3.bf16.msra.mxu0 %v850_v54 }
  0x21   : > { %v1146_v60 = vpop.eup %946  ;;  %852 = vmatprep.subr.bf16.mxu0 %v981_v3  ;;  %v350_v3 = vmul.f32 %v324_v61, %v323_v62 }
  0x24   : > { %854 = vmatpush3.bf16.msra.mxu0 %v853_v59 }
  0x27   : > { %794 = vmatmul.mubr.f32.vlgmr.msra.gmra.mrb[0].mxu0 %v324_v61 }
  0x34   : > { %348 = vadd.xlane.f32.xlu0 %v347_v2 }
  0x90   : > { %v354_v4 = vpop.permute.xlu0 %353 }
  0x91   : > { %v356_v5 = vmul.f32 %v354_v4, %v350_v3  ;;  %v441_v14 = vrot.slane %v354_v4, 1 }
  0x93   : > { %357 = vadd.xlane.f32.xlu1 %v356_v5 }
  0x94   : > { %v459_v6 = vpop.permute.xlu0 %458 }
  0x95   : > { %v461_v7 = vmul.f32 %v459_v6, %v324_v61 }
  0x97   : > { %v462_v8 = vrot.slane %v461_v7, 4 }
  0x99   : > { %v463_v9 = vadd.f32 %v462_v8, %v461_v7 }
  0x9b   : > { %v464_v10 = vrot.slane %v463_v9, 2 }
  0x9d   : > { %v465_v11 = vadd.f32 %v464_v10, %v463_v9 }
  0x9f   : > { %v466_v12 = vrot.slane %v465_v11, 1 }
  0xa1   : > { %v467_v15 = vadd.f32 %v466_v12, %v465_v11 }
  0xa3   : > { %v468_v21 = vmul.f32 %v467_v15, %v1167_v17 }
  0xa5   : > { %v469_v23 = vsel %vm346_vm1, %v468_v21, 0.0 }
  0xc1   : > { %v349_v41 = vpop.xlane.xlu0 %348 }
  0xfa   : > { %v433_v16 = vpop.f32.mrb[0].mxu0 }
  0xfb   : > { %v440_v18 = vmul.f32 %v438_v13, %v433_v16  ;;  %v795_v19 = vpop.f32.mrb[1].mxu0 }
  0xfd   : > { %v443_v20 = vmul.f32 %v441_v14, %v440_v18 }
  0xff   : > { %v445_v22 = vsel %vm444_vm2, %v443_v20, 0.0 }
 0x100   : > { %446 = vadd.xlane.f32.xlu1 %v445_v22 }
 0x104   : > { %470 = vadd.xlane.f32.xlu1 %v469_v23 }
 0x120   : > { %v358_v24 = vpop.xlane.xlu1 %357 }
 0x121   : > { %v359_v25 = vrot.slane %v358_v24, 4 }
 0x123   : > { %v360_v26 = vadd.f32 %v359_v25, %v358_v24 }
 0x125   : > { %v361_v27 = vrot.slane %v360_v26, 2 }
 0x127   : > { %v362_v28 = vadd.f32 %v361_v27, %v360_v26 }
 0x129   : > { %v363_v29 = vrot.slane %v362_v28, 1 }
 0x12b   : > { %v364_v30 = vadd.f32 %v363_v29, %v362_v28 }
 0x12d   : > { %879 = vpush %v364_v30 }
 0x15e   : > { %s880_s14 = spop %879 }
 0x15f   : > { %v366_v39 = vstv %s880_s14 }
 0x160   : > { %v472_v43 = vadd.f32 %v366_v39, %v349_v41 }
 0x18d   : > { %v447_v31 = vpop.xlane.xlu1 %446 }
 0x18e   : > { %v448_v32 = vrot.slane %v447_v31, 4 }
 0x190   : > { %v449_v33 = vadd.f32 %v448_v32, %v447_v31 }
 0x191   : > { %v471_v54 = vpop.xlane.xlu1 %470 }
 0x192   : > { %v450_v34 = vrot.slane %v449_v33, 2 }
 0x194   : > { %v451_v35 = vadd.f32 %v450_v34, %v449_v33 }
 0x196   : > { %v452_v37 = vrot.slane %v451_v35, 1 }
 0x198   : > { %v453_v38 = vadd.f32 %v452_v37, %v451_v35 }
 0x19a   : > { %881 = vpush %v453_v38 }
 0x1cb   : > { %s882_s15 = spop %881 }
 0x1cc   : > { %v455_v44 = vstv %s882_s15 }
 0x1cd   : > { %v473_v49 = vadd.f32 %v472_v43, %v455_v44 }
 0x1cf   : > { %v1171_v59 = vadd.f32 %v473_v49, %v471_v54 }
 0x1d0 LB: >> { %v856_v61 = vpack.c.bf16 %v1115_v40, %v1105_v36  ;;  %v985_v62 = vmov 0.0|0.0   ;;  %v519_v63 = vsel %vm346_vm1, %v975_v1, -inf  ;;  %v859_v0 = vpack.c.bf16 %v1119_v45, %v1117_v42  ;;  %s517_s17 = scalar_lea.vmem %s1103_s18, %s979_s16  ;;  %s515_s19 = scalar_lea.vmem %s1157_s8, %s979_s16  ;;  %s979_s16 = sphi %s1175_s16, %s513_s16   ;;  %v975_v1 = vphi %v507_v1, %v1227_v1  }
 0x1d1   : >> { %855 = vmatprep.subr.bf16.mxu0 %v985_v62  ;;  %520 = vmax.xlane.f32.xlu0 %v519_v63  ;;  %v862_v2 = vpack.c.bf16 %v1124_v47, %v1122_v46  ;;  %v865_v3 = vpack.c.bf16 %v1128_v50, %v1126_v48  ;;  %v868_v4 = vpack.c.bf16 %v1133_v52, %v1131_v51  ;;  %vm986_vm3 = vmmov 0   ;;  %v518_v10 = vld [vmem:[%s517_s17] sm:$0x1]  ;;  %s513_s16 = sadd.s32 1, %s979_s16  }
 0x1d2   : >> { %857 = vmatpush3.bf16.msra.mxu0 %v856_v61  ;;  %v871_v5 = vpack.c.bf16 %v1137_v55, %v1135_v53  ;;  %v874_v6 = vpack.c.bf16 %v1142_v57, %v1140_v56  ;;  %v987_v7 = vmov 0.0   ;;  %v877_v8 = vpack.c.bf16 %v1146_v60, %v1144_v58  ;;  %v516_v23 = vld [vmem:[%s515_s19] sm:$0x1]  ;;  %p510_p4 = scmp.ge.s32.totalorder %s513_s16, 8  }
 0x1d3   : >> { %858 = vmatprep.subr.bf16.mxu0 %v985_v62  ;;  %828 = vmatprep.mubr.msk.f32.mxu0 %vm986_vm3, %v987_v7  ;;  %v988_v9 = vmov 0   ;;  %vm600_vm4 = vcmp.gt.f32.partialorder %v518_v10, 0.5  ;;  %vm621_vm6 = vcmask (%p510_p4), 0  }
 0x1d4   : >> { %948 = vset.pattern.permute.xlu0 %v988_v9  ;;  %v601_v11 = vsel %vm600_vm4, 1, %v988_v9 }
 0x1d6   : >> { %860 = vmatpush3.bf16.msra.mxu0 %v859_v0 }
 0x1d7   : >> { %861 = vmatprep.subr.bf16.mxu0 %v985_v62 }
 0x1da   : >> { %863 = vmatpush3.bf16.msra.mxu0 %v862_v2 }
 0x1db   : >> { %864 = vmatprep.subr.bf16.mxu0 %v985_v62 }
 0x1de   : >> { %866 = vmatpush3.bf16.msra.mxu0 %v865_v3 }
 0x1df   : >> { %867 = vmatprep.subr.bf16.mxu0 %v985_v62 }
 0x1e2   : >> { %869 = vmatpush3.bf16.msra.mxu0 %v868_v4 }
 0x1e3   : >> { %870 = vmatprep.subr.bf16.mxu0 %v985_v62 }
 0x1e6   : >> { %872 = vmatpush3.bf16.msra.mxu0 %v871_v5 }
 0x1e7   : >> { %873 = vmatprep.subr.bf16.mxu0 %v985_v62  ;;  %603 = vperm.xlu0 %948, %v601_v11  }
 0x1ea   : >> { %875 = vmatpush3.bf16.msra.mxu0 %v874_v6 }
 0x1eb   : >> { %876 = vmatprep.subr.bf16.mxu0 %v985_v62 }
 0x1ee   : >> { %878 = vmatpush3.bf16.msra.mxu0 %v877_v8 }
 0x25e   : >> { %v521_v12 = vpop.xlane.xlu0 %520 }
 0x25f   : >> { %v522_v13 = vsub.f32 %v975_v1, %v521_v12 }
 0x261   : >> { %v523_v14 = vmul.f32 1.442695, %v522_v13 }
 0x263   : >> { %949 = vpow2.f32 %v523_v14 }
 0x266   : >> { %v604_v22 = vpop.permute.xlu0 %603 }
 0x267   : >> { %vm605_vm5 = vcmp.eq.s32.totalorder %v604_v22, 1 }
 0x26d   : >> { %v950_v15 = vpop.eup %949 }
 0x26e   : >> { %829 = vmatmul.mubr.f32.vlgmr.msra.gmra.mrb[0].mxu0 %v950_v15 }
 0x341   : >> { %v591_v16 = vpop.f32.mrb[0].mxu0 }
 0x342   : >> { %v595_v18 = vmax.f32 %v591_v16, 1e-30  ;;  %v830_v19 = vpop.f32.mrb[1].mxu0 }
 0x344   : >> { %951 = vlog2.f32 %v595_v18 }
 0x34e   : >> { %v952_v20 = vpop.eup %951 }
 0x34f   : >> { %v597_v21 = vmul.f32 0.6931472, %v952_v20 }
 0x350   : > { %512 = sbr.rel (!%p510_p4) target bundleno = 464 (0x1d0), region = 96 }
 0x351   : >> { %v598_v24 = vadd.f32 %v597_v21, %v521_v12 }
 0x353   : >> { %v599_v25 = vadd.f32 %v598_v24, %v516_v23 }
 0x355   : >> { %v606_v26 = vsel %vm605_vm5, %v599_v25, %v975_v1  }
 0x356   : >> { %v1227_v1 = vmov %v606_v26  ;;  %v607_v27 = vadd.f32 (%p510_p4), %v606_v26, %v1167_v17 }
 0x358   : > { %v608_v28 = vsel %vm346_vm1, %v607_v27, -inf }
 0x359   : > { %609 = vmax.xlane.f32.xlu0 %v608_v28 }
 0x3e6   : > { %v610_v29 = vpop.xlane.xlu0 %609 }
 0x3e7   : > { %v611_v30 = vsub.f32 %v607_v27, %v610_v29 }
 0x3e9   : > { %v612_v31 = vmul.f32 1.442695, %v611_v30 }
 0x3eb   : > { %953 = vpow2.f32 %v612_v31 }
 0x3f5   : > { %v954_v32 = vpop.eup %953 }
 0x3f6   : > { %v614_v1 = vsel %vm346_vm1, %v954_v32, 0.0 }
 0x3f7   : > { %615 = vadd.xlane.f32.xlu0 %v614_v1 }
 0x484   : > { %v616_v33 = vpop.xlane.xlu0 %615 }
 0x485   : > { %955 = vlog2.f32 %v616_v33 }
 0x48f   : > { %v956_v34 = vpop.eup %955 }
 0x490   : > { %v618_v35 = vmul.f32 0.6931472, %v956_v34 }
 0x492   : > { %v619_v37 = vadd.f32 %v618_v35, %v610_v29 }
 0x494   : > { %v620_v36 = vsub.f32 %v619_v37, %v1171_v59 }
 0x496   : > { %622 = vst.msk [vmem:[%s322_s13] sm:$0x1] %vm621_vm6, %v620_v36 }
 0x497 PF: > { %s17_s24 = sadd.s32 1, %s971_s24  }
 0x498   : > { %p14_p5 = scmp.ge.s32.totalorder %s17_s24, 4  }
 0x49a   :  { %16 = sbr.rel (!%p14_p5) target bundleno = 1 (0x1), region = 107 }

</bundles_post_ra>
